<compile_context>
chip_gen: v7x
topology: tpu7x:2x2x1
jax: 0.10.0
libtpu: 0.0.40
codegen_flags: <defaults>
</compile_context>

<pallas_src>
import functools

import jax
import jax.numpy as jnp
from jax.experimental import pallas as pl
from jax.experimental.pallas import tpu as pltpu


def _channel_attention_kernel(x_ref, w1_ref, b1_ref, w2_ref, b2_ref, o_ref):
    # x_ref/o_ref: (TB, C, HW)  -- HW on lanes, C on sublanes.
    # w1: (C, Ch) ; b1: (1, Ch) ; w2: (Ch, C) ; b2: (1, C)
    tb = x_ref.shape[0]

    # Global pools over the spatial (lane) axis -> (TB, C); accumulate in f32.
    # x_ref is indexed per consumer so no full-tile temporary is pinned.
    avg_pool = jnp.mean(x_ref[...], axis=-1, dtype=jnp.float32)       # (TB, C)
    max_pool = jnp.max(x_ref[...], axis=-1).astype(jnp.float32)       # (TB, C)

    # Fused shared MLP: one MXU pass per layer over the stacked pools.
    pooled = jnp.concatenate([avg_pool, max_pool], axis=0)            # (2*TB, C)
    h = jnp.dot(pooled, w1_ref[...], preferred_element_type=jnp.float32) + b1_ref[...]
    h = jnp.maximum(h, 0.0)                                           # ReLU
    att2 = jnp.dot(h, w2_ref[...], preferred_element_type=jnp.float32) + b2_ref[...]

    att = att2[:tb] + att2[tb:]                                       # (TB, C)
    scale = jax.nn.sigmoid(att).astype(x_ref.dtype)                   # (TB, C)

    # Per-channel scalar broadcast along the lane (HW) axis; native dtype,
    # lane-dense stores when HW % 128 == 0.
    o_ref[...] = (x_ref[...] * scale[:, :, None]).astype(o_ref.dtype)


def _default_budgets():
    """(max_tile_bytes, vmem_limit_bytes) sized from the part's VMEM capacity."""
    try:
        vmem = pltpu.get_tpu_info().vmem_capacity_bytes
    except Exception:  # off-TPU / older jax: fall back to the v7x-safe budget
        vmem = 64 * 1024 * 1024
    if vmem >= 96 * 1024 * 1024:          # v5e / v6e (128 MiB VMEM)
        return 16 * 1024 * 1024, 96 * 1024 * 1024
    return 8 * 1024 * 1024, 48 * 1024 * 1024   # v7x (64 MiB VMEM)


@functools.partial(jax.jit, static_argnames=("tb", "vmem_limit_bytes"))
def _channel_attention_impl(x, w1, b1, w2, b2, *, tb, vmem_limit_bytes):
    B, C, H, W = x.shape
    HW = H * W
    Ch = w1.shape[1]
    itemsize = x.dtype.itemsize

    # Contiguous reshape only -- no data movement, no transpose.
    x_flat = x.reshape(B, C, HW)

    cost = pl.CostEstimate(
        flops=3 * B * C * HW + 8 * B * C * Ch,          # pools + rescale + tiny MLP
        transcendentals=B * C,                           # sigmoid
        bytes_accessed=2 * B * C * HW * itemsize + 4 * (2 * C * Ch + Ch + C),
    )

    out_flat = pl.pallas_call(
        _channel_attention_kernel,
        out_shape=jax.ShapeDtypeStruct((B, C, HW), x.dtype),
        grid_spec=pltpu.PrefetchScalarGridSpec(
            num_scalar_prefetch=0,
            grid=(pl.cdiv(B, tb),),
            in_specs=[
                pl.BlockSpec((tb, C, HW), lambda b: (b, 0, 0)),   # x tile
                pl.BlockSpec((C, Ch), lambda b: (0, 0)),          # w1 (full)
                pl.BlockSpec((1, Ch), lambda b: (0, 0)),          # b1 (full)
                pl.BlockSpec((Ch, C), lambda b: (0, 0)),          # w2 (full)
                pl.BlockSpec((1, C), lambda b: (0, 0)),           # b2 (full)
            ],
            out_specs=pl.BlockSpec((tb, C, HW), lambda b: (b, 0, 0)),
        ),
        compiler_params=pltpu.CompilerParams(
            # Batch-tile axis is fully independent -> megacore sharding on v7x.
            dimension_semantics=("parallel",),
            vmem_limit_bytes=vmem_limit_bytes,
        ),
        cost_estimate=cost,
    )(x_flat, w1, b1, w2, b2)

    return out_flat.reshape(B, C, H, W)


def channel_attention(x, w1, b1, w2, b2, *, max_tile_bytes=None, vmem_limit_bytes=None):
    """x: (B, C, H, W); weights stored as (in, out) so y = p @ W + b."""
    B, C, H, W = x.shape

    d_tile, d_vmem = _default_budgets()
    if max_tile_bytes is None:
        max_tile_bytes = d_tile
    if vmem_limit_bytes is None:
        vmem_limit_bytes = d_vmem

    # Batch tile from the per-tile byte budget (in + out tiles are each
    # double-buffered => ~4x tile resident in VMEM).
    bytes_per_image = H * W * C * x.dtype.itemsize
    tb = max(1, min(B, max_tile_bytes // max(1, bytes_per_image)))
    # Keep at least 2 grid steps: both v7x TensorCores get work and the DMA
    # pipeline has fill/drain to hide.
    if B > 1:
        tb = min(tb, max(1, B // 2))
    # Keep the (2*tb, C) pooled matrix sublane-tile aligned.
    if tb >= 8:
        tb = (tb // 8) * 8

    return _channel_attention_impl(
        x, w1, b1, w2, b2, tb=tb, vmem_limit_bytes=vmem_limit_bytes
    )


def _init_params(key, in_channels, reduction_ratio):
    """Deterministic init matching nn.Linear default (uniform +/- 1/sqrt(fan_in)).
    Weights are stored transposed relative to PyTorch: shape (in, out)."""
    hidden = in_channels // reduction_ratio
    k1, k2, k3, k4 = jax.random.split(key, 4)
    bound1 = 1.0 / jnp.sqrt(in_channels)
    bound2 = 1.0 / jnp.sqrt(hidden)
    w1 = jax.random.uniform(k1, (in_channels, hidden), jnp.float32, -bound1, bound1)
    b1 = jax.random.uniform(k2, (1, hidden), jnp.float32, -bound1, bound1)
    w2 = jax.random.uniform(k3, (hidden, in_channels), jnp.float32, -bound2, bound2)
    b2 = jax.random.uniform(k4, (1, in_channels), jnp.float32, -bound2, bound2)
    return w1, b1, w2, b2


def _reference(x, w1, b1, w2, b2):
    """Pure-JAX reference mirroring the PyTorch ChannelAttention forward."""
    avg_p = jnp.mean(x, axis=(2, 3))
    max_p = jnp.max(x, axis=(2, 3))

    def mlp(p):
        h = jnp.maximum(p @ w1 + b1, 0.0)
        return h @ w2 + b2

    att = mlp(avg_p) + mlp(max_p)
    scale = jax.nn.sigmoid(att)[:, :, None, None]
    return x * scale


if __name__ == "__main__":
    reduction_ratio = 16
    key = jax.random.PRNGKey(0)

    # Test 1: lane-dense spatial (HW = 256), batch tiled across 2 grid steps.
    B, C, H, W = 16, 64, 16, 16
    kx, kp = jax.random.split(key)
    x = jax.random.normal(kx, (B, C, H, W), dtype=jnp.float32)
    w1, b1, w2, b2 = _init_params(kp, C, reduction_ratio)
    out = jax.block_until_ready(channel_attention(x, w1, b1, w2, b2))
    ref = _reference(x, w1, b1, w2, b2)
    assert out.shape == (B, C, H, W)
    assert jnp.allclose(out, ref, atol=1e-5, rtol=1e-5)

    # Test 2: awkward batch (B=7) with a tiny tile budget -> cdiv grid with a
    # partial last batch block, and HW=64 exercising the masked-lane path.
    B2, C2, H2, W2 = 7, 64, 8, 8
    kx2, kp2 = jax.random.split(kp)
    x2 = jax.random.normal(kx2, (B2, C2, H2, W2), dtype=jnp.float32)
    w1b, b1b, w2b, b2b = _init_params(kp2, C2, reduction_ratio)
    out2 = jax.block_until_ready(
        channel_attention(x2, w1b, b1b, w2b, b2b, max_tile_bytes=64 * 1024)
    )
    ref2 = _reference(x2, w1b, b1b, w2b, b2b)
    assert out2.shape == (B2, C2, H2, W2)
    assert jnp.allclose(out2, ref2, atol=1e-5, rtol=1e-5)

    print("KERNEL_OK")
</pallas_src>

<mosaic_0001>
module attributes {stable_mosaic.version = 11 : i64} {
  func.func @_channel_attention_kernel(%arg0: i32, %arg1: memref<8x64x256xf32, #tpu.memory_space<vmem>>, %arg2: memref<64x4xf32, #tpu.memory_space<vmem>>, %arg3: memref<1x4xf32, #tpu.memory_space<vmem>>, %arg4: memref<4x64xf32, #tpu.memory_space<vmem>>, %arg5: memref<1x64xf32, #tpu.memory_space<vmem>>, %arg6: memref<8x64x256xf32, #tpu.memory_space<vmem>>) attributes {dimension_semantics = [#tpu.dimension_semantics<parallel>], iteration_bounds = array<i64: 2>, scalar_prefetch = 0 : i64, scratch_operands = 0 : i64, tpu.core_type = #tpu.core_type<tc>, window_params = [{transform_indices = @transform_0, window_bounds = array<i64: 8, 64, 256>}, {pipeline_mode = #tpu.pipeline_mode<synchronous>, transform_indices = @transform_1, window_bounds = array<i64: 64, 4>}, {pipeline_mode = #tpu.pipeline_mode<synchronous>, transform_indices = @transform_2, window_bounds = array<i64: 1, 4>}, {pipeline_mode = #tpu.pipeline_mode<synchronous>, transform_indices = @transform_3, window_bounds = array<i64: 4, 64>}, {pipeline_mode = #tpu.pipeline_mode<synchronous>, transform_indices = @transform_4, window_bounds = array<i64: 1, 64>}, {transform_indices = @transform_5, window_bounds = array<i64: 8, 64, 256>}]} {
    %c0 = arith.constant 0 : index
    %c0_0 = arith.constant 0 : index
    %c0_1 = arith.constant 0 : index
    %0 = vector.load %arg1[%c0, %c0_0, %c0_1] : memref<8x64x256xf32, #tpu.memory_space<vmem>>, vector<8x64x256xf32>
    %cst = arith.constant dense<0.000000e+00> : vector<8x64xf32>
    %1 = vector.multi_reduction <add>, %0, %cst [2] : vector<8x64x256xf32> to vector<8x64xf32>
    %cst_2 = arith.constant 2.560000e+02 : f32
    %2 = vector.broadcast %cst_2 : f32 to vector<8x64xf32>
    %3 = arith.divf %1, %2 : vector<8x64xf32>
    %c0_3 = arith.constant 0 : index
    %c0_4 = arith.constant 0 : index
    %c0_5 = arith.constant 0 : index
    %4 = vector.load %arg1[%c0_3, %c0_4, %c0_5] : memref<8x64x256xf32, #tpu.memory_space<vmem>>, vector<8x64x256xf32>
    %cst_6 = arith.constant dense<0xFF800000> : vector<8x64xf32>
    %5 = vector.multi_reduction <maximumf>, %4, %cst_6 [2] : vector<8x64x256xf32> to vector<8x64xf32>
    %6 = tpu.concatenate %3, %5 in 0 : vector<8x64xf32>, vector<8x64xf32> -> vector<16x64xf32>
    %c0_7 = arith.constant 0 : index
    %c0_8 = arith.constant 0 : index
    %7 = vector.load %arg2[%c0_7, %c0_8] : memref<64x4xf32, #tpu.memory_space<vmem>>, vector<64x4xf32>
    %cst_9 = arith.constant dense<0.000000e+00> : vector<16x4xf32>
    %8 = tpu.matmul %6, %7, %cst_9 {dimension_numbers = #tpu.dot_dimension_numbers<[1], [0], [0], [1], [0, 0, 1, 1], [], []>} : vector<16x64xf32>, vector<64x4xf32>, vector<16x4xf32> -> vector<16x4xf32>
    %c0_10 = arith.constant 0 : index
    %c0_11 = arith.constant 0 : index
    %9 = vector.load %arg3[%c0_10, %c0_11] : memref<1x4xf32, #tpu.memory_space<vmem>>, vector<1x4xf32>
    %10 = vector.broadcast %9 : vector<1x4xf32> to vector<16x4xf32>
    %11 = arith.addf %8, %10 : vector<16x4xf32>
    %cst_12 = arith.constant 0.000000e+00 : f32
    %12 = vector.broadcast %cst_12 : f32 to vector<16x4xf32>
    %13 = arith.maximumf %11, %12 : vector<16x4xf32>
    %c0_13 = arith.constant 0 : index
    %c0_14 = arith.constant 0 : index
    %14 = vector.load %arg4[%c0_13, %c0_14] : memref<4x64xf32, #tpu.memory_space<vmem>>, vector<4x64xf32>
    %cst_15 = arith.constant dense<0.000000e+00> : vector<16x64xf32>
    %15 = tpu.matmul %13, %14, %cst_15 {dimension_numbers = #tpu.dot_dimension_numbers<[1], [0], [0], [1], [0, 0, 1, 1], [], []>} : vector<16x4xf32>, vector<4x64xf32>, vector<16x64xf32> -> vector<16x64xf32>
    %c0_16 = arith.constant 0 : index
    %c0_17 = arith.constant 0 : index
    %16 = vector.load %arg5[%c0_16, %c0_17] : memref<1x64xf32, #tpu.memory_space<vmem>>, vector<1x64xf32>
    %17 = vector.broadcast %16 : vector<1x64xf32> to vector<16x64xf32>
    %18 = arith.addf %15, %17 : vector<16x64xf32>
    %19 = vector.extract_strided_slice %18 {offsets = [0, 0], sizes = [8, 64], strides = [1, 1]} : vector<16x64xf32> to vector<8x64xf32>
    %20 = vector.extract_strided_slice %18 {offsets = [8, 0], sizes = [8, 64], strides = [1, 1]} : vector<16x64xf32> to vector<8x64xf32>
    %21 = arith.addf %19, %20 : vector<8x64xf32>
    %22 = arith.negf %21 : vector<8x64xf32>
    %23 = math.exp %22 : vector<8x64xf32>
    %cst_18 = arith.constant 1.000000e+00 : f32
    %24 = vector.broadcast %cst_18 : f32 to vector<8x64xf32>
    %25 = arith.addf %24, %23 : vector<8x64xf32>
    %26 = arith.divf %24, %25 : vector<8x64xf32>
    %c0_19 = arith.constant 0 : index
    %c0_20 = arith.constant 0 : index
    %c0_21 = arith.constant 0 : index
    %27 = vector.load %arg1[%c0_19, %c0_20, %c0_21] : memref<8x64x256xf32, #tpu.memory_space<vmem>>, vector<8x64x256xf32>
    %28 = vector.shape_cast %26 : vector<8x64xf32> to vector<8x64x1xf32>
    %29 = vector.broadcast %28 : vector<8x64x1xf32> to vector<8x64x256xf32>
    %30 = arith.mulf %27, %29 : vector<8x64x256xf32>
    %c0_22 = arith.constant 0 : index
    %c0_23 = arith.constant 0 : index
    %c0_24 = arith.constant 0 : index
    %31 = vector.load %arg6[%c0_22, %c0_23, %c0_24] : memref<8x64x256xf32, #tpu.memory_space<vmem>>, vector<8x64x256xf32>
    tpu.vector_store %arg6[%c0_22, %c0_23, %c0_24], %30 {strides = array<i32>} : memref<8x64x256xf32, #tpu.memory_space<vmem>>, vector<8x64x256xf32>,
    return
  }
  func.func @transform_0(%arg0: i32) -> (i32, i32, i32) {
    %c0_i32 = arith.constant 0 : i32
    %c0_i32_0 = arith.constant 0 : i32
    %c0_i32_1 = arith.constant 0 : i32
    return %arg0, %c0_i32, %c0_i32_0 : i32, i32, i32
  }
  func.func @transform_1(%arg0: i32) -> (i32, i32) {
    %c0_i32 = arith.constant 0 : i32
    %c0_i32_0 = arith.constant 0 : i32
    %c0_i32_1 = arith.constant 0 : i32
    return %c0_i32, %c0_i32_0 : i32, i32
  }
  func.func @transform_2(%arg0: i32) -> (i32, i32) {
    %c0_i32 = arith.constant 0 : i32
    %c0_i32_0 = arith.constant 0 : i32
    %c0_i32_1 = arith.constant 0 : i32
    return %c0_i32, %c0_i32_0 : i32, i32
  }
  func.func @transform_3(%arg0: i32) -> (i32, i32) {
    %c0_i32 = arith.constant 0 : i32
    %c0_i32_0 = arith.constant 0 : i32
    %c0_i32_1 = arith.constant 0 : i32
    return %c0_i32, %c0_i32_0 : i32, i32
  }
  func.func @transform_4(%arg0: i32) -> (i32, i32) {
    %c0_i32 = arith.constant 0 : i32
    %c0_i32_0 = arith.constant 0 : i32
    %c0_i32_1 = arith.constant 0 : i32
    return %c0_i32, %c0_i32_0 : i32, i32
  }
  func.func @transform_5(%arg0: i32) -> (i32, i32, i32) {
    %c0_i32 = arith.constant 0 : i32
    %c0_i32_0 = arith.constant 0 : i32
    %c0_i32_1 = arith.constant 0 : i32
    return %arg0, %c0_i32, %c0_i32_0 : i32, i32, i32
  }
}

</mosaic_0001>

<bundles_post_ra>
// kernel: _channel_attention_impl.1
= control target key start
LH: loop header
LB: loop body
LE: loop exit
PB: predicated region body
PF: predicated region fallthrough
CT: control target
= control target key end

     0   :  { %s2645_s18 = smov 0   ;;  %s4157_s0 = inlined_call_operand.vmem [shape: f32[16,64,256], index: 0, kind: input, shape index: {}]   ;;  %s4158_s1 = inlined_call_operand.vmem [shape: f32[64,4], index: 1, kind: input, shape index: {}]   ;;  %s4159_s2 = inlined_call_operand.vmem [shape: f32[1,4], index: 2, kind: input, shape index: {}]   ;;  %s4160_s3 = inlined_call_operand.vmem [shape: f32[4,64], index: 3, kind: input, shape index: {}]   ;;  %s4161_s4 = inlined_call_operand.vmem [shape: f32[1,64], index: 4, kind: input, shape index: {}]   ;;  %s4162_s5 = inlined_call_operand.vmem [shape: f32[16,64,256], index: 5, kind: output, shape index: {}]  }
   0x1 LB: > { %s2391_s19 = sadd.s32 4294967295, %s2613_s18   ;;  %p2395_p0 = scmp.ge.s32.totalorder %s2613_s18, 1  ;;  %s2613_s18 = sphi %s2645_s18, %s15_s18  }
   0x2   : > { %p189_p1 = scmp.lt.s32.totalorder %s2613_s18, 3 }
   0x4   : > { %p190_p2 = pnand %p2395_p0, %p189_p1 }
   0x6   : > { %193 = sbr.rel (%p190_p2) target bundleno = 1131 (0x46b), region = 40 }
   0xd   : > { %s2396_s20 = sshll.u32 %s2391_s19, 3  ;;  %vm885_vm0 = vcmask 130112   ;;  %vm892_vm1 = vcmask 195712   ;;  %vm899_vm2 = vcmask 261312   ;;  %vm906_vm3 = vcmask 326912  }
   0xe   : > { %p220_p3 = scmp.lt.s32.totalorder %s2396_s20, 15  ;;  %vm913_vm4 = vcmask 392512   ;;  %vm920_vm5 = vcmask 458112   ;;  %vm927_vm6 = vcmask 523712   ;;  %vm1202_vm7 = vcmask 1041409  }
   0xf   : > { %vm1204_vm8 = vcmask 1042434   ;;  %vm1206_vm9 = vcmask 1043459   ;;  %vm1208_vm10 = vcmask 1044484   ;;  %vm1210_vm11 = vcmask 1045509  }
  0x10   : > { %s4225_s20 = smov (!%p220_p3, %s2396_s20), 15  ;;  %vm1212_vm12 = vcmask 1046534   ;;  %vm1214_vm13 = vcmask 1047559   ;;  %vm1614_vm14 = vcmask 523264   ;;  %vm1711_vm15 = vcmask 1043456  }
  0x11   : > { %s2412_s21 = sshll.u32 %s4225_s20, 7 }
  0x12   : > { %s2661_s24 = scalar_lea.vmem %s4157_s0, %s2412_s21  ;;  %s3890_s28 = scalar_lea.vmem %s4162_s5, %s2412_s21 }
  0x13   : > { %v2664_v0 = vld [vmem:[%s2661_s24 + $0x80] sm:$0xff]  ;;  %v2667_v1 = vld [vmem:[%s2661_s24 + $0x88] sm:$0xff]  ;;  %v2678_v5 = vld [vmem:[%s2661_s24 + $0x90] sm:$0xff] }
  0x14   : > { %v2670_v2 = vld [vmem:[%s2661_s24] sm:$0xff]  ;;  %v385_v3 = vadd.f32 %v2667_v1, %v2664_v0  ;;  %v2675_v4 = vld [vmem:[%s2661_s24 + $0x8] sm:$0xff]  ;;  %v2681_v6 = vld [vmem:[%s2661_s24 + $0x98] sm:$0xff]  ;;  %v642_v58 = vmax.f32 %v2664_v0, %v2667_v1 }
  0x15   : > { %v361_v7 = vadd.f32 %v2675_v4, %v2670_v2  ;;  %v2686_v8 = vld [vmem:[%s2661_s24 + $0x10] sm:$0xff]  ;;  %v2689_v9 = vld [vmem:[%s2661_s24 + $0x18] sm:$0xff]  ;;  %v388_v10 = vadd.f32 %v2681_v6, %v2678_v5  ;;  %v2696_v12 = vld [vmem:[%s2661_s24 + $0xa0] sm:$0xff]  ;;  %v618_v56 = vmax.f32 %v2670_v2, %v2675_v4  ;;  %v645_v63 = vmax.f32 %v2678_v5, %v2681_v6 }
  0x16   : > { %386 = vadd.xlane.f32.xlu1 %v385_v3  ;;  %v364_v11 = vadd.f32 %v2689_v9, %v2686_v8  ;;  %v2699_v13 = vld [vmem:[%s2661_s24 + $0xa8] sm:$0xff]  ;;  %v2702_v14 = vld [vmem:[%s2661_s24 + $0x20] sm:$0xff]  ;;  %v2712_v18 = vld [vmem:[%s2661_s24 + $0x110] sm:$0xff]  ;;  %v621_v59 = vmax.f32 %v2686_v8, %v2689_v9 }
  0x17   : > { %362 = vadd.xlane.f32.xlu0 %v361_v7  ;;  %v2705_v15 = vld [vmem:[%s2661_s24 + $0x28] sm:$0xff]  ;;  %v391_v16 = vadd.f32 %v2699_v13, %v2696_v12  ;;  %v2715_v19 = vld [vmem:[%s2661_s24 + $0x118] sm:$0xff]  ;;  %v2718_v20 = vld [vmem:[%s2661_s24 + $0x100] sm:$0xff] }
  0x18   : > { %v367_v17 = vadd.f32 %v2705_v15, %v2702_v14  ;;  %v2721_v21 = vld [vmem:[%s2661_s24 + $0x108] sm:$0xff]  ;;  %v412_v22 = vadd.f32 %v2715_v19, %v2712_v18  ;;  %v2728_v24 = vld [vmem:[%s2661_s24 + $0xb0] sm:$0xff]  ;;  %v2731_v25 = vld [vmem:[%s2661_s24 + $0xb8] sm:$0xff] }
  0x19   : > { %v409_v23 = vadd.f32 %v2721_v21, %v2718_v20  ;;  %v2734_v26 = vld [vmem:[%s2661_s24 + $0x30] sm:$0xff]  ;;  %v2737_v27 = vld [vmem:[%s2661_s24 + $0x38] sm:$0xff]  ;;  %v394_v28 = vadd.f32 %v2731_v25, %v2728_v24  ;;  %v2744_v30 = vld [vmem:[%s2661_s24 + $0x180] sm:$0xff] }
  0x1a   : > { %389 = vadd.xlane.f32.xlu1 %v388_v10  ;;  %v370_v29 = vadd.f32 %v2737_v27, %v2734_v26  ;;  %v2747_v31 = vld [vmem:[%s2661_s24 + $0x188] sm:$0xff]  ;;  %v2750_v32 = vld [vmem:[%s2661_s24 + $0x120] sm:$0xff]  ;;  %v2766_v38 = vld [vmem:[%s2661_s24 + $0x190] sm:$0xff] }
  0x1b   : > { %365 = vadd.xlane.f32.xlu0 %v364_v11  ;;  %v2753_v33 = vld [vmem:[%s2661_s24 + $0x128] sm:$0xff]  ;;  %v433_v34 = vadd.f32 %v2747_v31, %v2744_v30  ;;  %v2760_v36 = vld [vmem:[%s2661_s24 + $0x40] sm:$0xff]  ;;  %v2769_v39 = vld [vmem:[%s2661_s24 + $0x198] sm:$0xff] }
  0x1c   : > { %v415_v35 = vadd.f32 %v2753_v33, %v2750_v32  ;;  %v2763_v37 = vld [vmem:[%s2661_s24 + $0x48] sm:$0xff]  ;;  %v436_v41 = vadd.f32 %v2769_v39, %v2766_v38  ;;  %v2776_v42 = vld [vmem:[%s2661_s24 + $0x130] sm:$0xff]  ;;  %v2779_v43 = vld [vmem:[%s2661_s24 + $0x138] sm:$0xff] }
  0x1d   : > { %v373_v40 = vadd.f32 %v2763_v37, %v2760_v36  ;;  %v2782_v44 = vld [vmem:[%s2661_s24 + $0xc0] sm:$0xff]  ;;  %v2785_v45 = vld [vmem:[%s2661_s24 + $0xc8] sm:$0xff]  ;;  %v418_v46 = vadd.f32 %v2779_v43, %v2776_v42  ;;  %v2808_v54 = vld [vmem:[%s2661_s24 + $0x210] sm:$0xff] }
  0x1e   : > { %392 = vadd.xlane.f32.xlu1 %v391_v16  ;;  %v397_v47 = vadd.f32 %v2785_v45, %v2782_v44  ;;  %v2792_v48 = vld [vmem:[%s2661_s24 + $0x200] sm:$0xff]  ;;  %v2795_v49 = vld [vmem:[%s2661_s24 + $0x208] sm:$0xff]  ;;  %v2811_v55 = vld [vmem:[%s2661_s24 + $0x218] sm:$0xff] }
  0x1f   : > { %368 = vadd.xlane.f32.xlu0 %v367_v17  ;;  %v2798_v50 = vld [vmem:[%s2661_s24 + $0x1a0] sm:$0xff]  ;;  %v2801_v51 = vld [vmem:[%s2661_s24 + $0x1a8] sm:$0xff]  ;;  %v457_v52 = vadd.f32 %v2795_v49, %v2792_v48  ;;  %v460_v57 = vadd.f32 %v2811_v55, %v2808_v54  ;;  %v2822_v60 = vld [vmem:[%s2661_s24 + $0x50] sm:$0xff] }
  0x20   : > { %v439_v53 = vadd.f32 %v2801_v51, %v2798_v50  ;;  %v2825_v61 = vld [vmem:[%s2661_s24 + $0x58] sm:$0xff]  ;;  %v2832_v0 = vld [vmem:[%s2661_s24 + $0x140] sm:$0xff]  ;;  %v2835_v1 = vld [vmem:[%s2661_s24 + $0x148] sm:$0xff] }
  0x21   : > { %v376_v62 = vadd.f32 %v2825_v61, %v2822_v60  ;;  %v2838_v2 = vld [vmem:[%s2661_s24 + $0xd0] sm:$0xff]  ;;  %v2841_v3 = vld [vmem:[%s2661_s24 + $0xd8] sm:$0xff]  ;;  %v421_v4 = vadd.f32 %v2835_v1, %v2832_v0  ;;  %v2848_v6 = vld [vmem:[%s2661_s24 + $0x220] sm:$0xff] }
  0x22   : > { %413 = vadd.xlane.f32.xlu1 %v412_v22  ;;  %v400_v5 = vadd.f32 %v2841_v3, %v2838_v2  ;;  %v2851_v7 = vld [vmem:[%s2661_s24 + $0x228] sm:$0xff]  ;;  %v2854_v8 = vld [vmem:[%s2661_s24 + $0x1b0] sm:$0xff]  ;;  %v2857_v9 = vld [vmem:[%s2661_s24 + $0x1b8] sm:$0xff] }
  0x23   : > { %410 = vadd.xlane.f32.xlu0 %v409_v23  ;;  %v463_v10 = vadd.f32 %v2851_v7, %v2848_v6  ;;  %v442_v11 = vadd.f32 %v2857_v9, %v2854_v8  ;;  %v2864_v16 = vld [vmem:[%s2661_s24 + $0x290] sm:$0xff]  ;;  %v2867_v17 = vld [vmem:[%s2661_s24 + $0x298] sm:$0xff]  ;;  %v2870_v22 = vld [vmem:[%s2661_s24 + $0x280] sm:$0xff] }
  0x24   : > { %v2873_v23 = vld [vmem:[%s2661_s24 + $0x288] sm:$0xff] }
  0x26   : > { %395 = vadd.xlane.f32.xlu1 %v394_v28  ;;  %v484_v28 = vadd.f32 %v2867_v17, %v2864_v16 }
  0x27   : > { %371 = vadd.xlane.f32.xlu0 %v370_v29  ;;  %v481_v29 = vadd.f32 %v2873_v23, %v2870_v22 }
  0x2a   : > { %434 = vadd.xlane.f32.xlu1 %v433_v34  ;;  %v648_v34 = vmax.f32 %v2696_v12, %v2699_v13  ;;  %v2894_v12 = vld [vmem:[%s2661_s24 + $0x60] sm:$0xff]  ;;  %v2897_v13 = vld [vmem:[%s2661_s24 + $0x68] sm:$0xff] }
  0x2b   : > { %416 = vadd.xlane.f32.xlu0 %v415_v35  ;;  %v624_v35 = vmax.f32 %v2702_v14, %v2705_v15  ;;  %v379_v15 = vadd.f32 %v2897_v13, %v2894_v12 }
  0x2e   : > { %374 = vadd.xlane.f32.xlu1 %v373_v40  ;;  %v669_v40 = vmax.f32 %v2712_v18, %v2715_v19  ;;  %v2904_v18 = vld [vmem:[%s2661_s24 + $0x1c0] sm:$0xff]  ;;  %v2907_v19 = vld [vmem:[%s2661_s24 + $0x1c8] sm:$0xff] }
  0x2f   : > { %437 = vadd.xlane.f32.xlu0 %v436_v41  ;;  %v666_v41 = vmax.f32 %v2718_v20, %v2721_v21  ;;  %v2910_v20 = vld [vmem:[%s2661_s24 + $0x150] sm:$0xff]  ;;  %v2913_v21 = vld [vmem:[%s2661_s24 + $0x158] sm:$0xff] }
  0x32   : > { %419 = vadd.xlane.f32.xlu1 %v418_v46  ;;  %v2888_v46 = vld [vmem:[%s2661_s24 + $0xe0] sm:$0xff] }
  0x33   : > { %398 = vadd.xlane.f32.xlu0 %v397_v47  ;;  %v2891_v47 = vld [vmem:[%s2661_s24 + $0xe8] sm:$0xff] }
  0x34   : > { %v403_v14 = vadd.f32 %v2891_v47, %v2888_v46 }
  0x36   : > { %458 = vadd.xlane.f32.xlu1 %v457_v52  ;;  %v445_v52 = vadd.f32 %v2907_v19, %v2904_v18 }
  0x37   : > { %440 = vadd.xlane.f32.xlu0 %v439_v53  ;;  %v424_v53 = vadd.f32 %v2913_v21, %v2910_v20 }
  0x3a   : > { %619 = vmax.xlane.f32.xlu1 %v618_v56  ;;  %v2920_v56 = vld [vmem:[%s2661_s24 + $0x2a0] sm:$0xff] }
  0x3b   : > { %461 = vadd.xlane.f32.xlu0 %v460_v57  ;;  %v2923_v57 = vld [vmem:[%s2661_s24 + $0x2a8] sm:$0xff] }
  0x3e   : > { %643 = vmax.xlane.f32.xlu1 %v642_v58  ;;  %v2926_v58 = vld [vmem:[%s2661_s24 + $0x230] sm:$0xff] }
  0x3f   : > { %622 = vmax.xlane.f32.xlu0 %v621_v59  ;;  %v2929_v59 = vld [vmem:[%s2661_s24 + $0x238] sm:$0xff] }
  0x42   : > { %377 = vadd.xlane.f32.xlu1 %v376_v62  ;;  %v487_v62 = vadd.f32 %v2923_v57, %v2920_v56 }
  0x43   : > { %646 = vmax.xlane.f32.xlu0 %v645_v63  ;;  %v466_v63 = vadd.f32 %v2929_v59, %v2926_v58 }
  0x46   : > { %422 = vadd.xlane.f32.xlu1 %v421_v4  ;;  %v2936_v4 = vld [vmem:[%s2661_s24 + $0x310] sm:$0xff] }
  0x47   : > { %401 = vadd.xlane.f32.xlu0 %v400_v5  ;;  %v2939_v5 = vld [vmem:[%s2661_s24 + $0x318] sm:$0xff] }
  0x4a   : > { %464 = vadd.xlane.f32.xlu1 %v463_v10  ;;  %v2942_v10 = vld [vmem:[%s2661_s24 + $0x300] sm:$0xff] }
  0x4b   : > { %443 = vadd.xlane.f32.xlu0 %v442_v11  ;;  %v2945_v11 = vld [vmem:[%s2661_s24 + $0x308] sm:$0xff] }
  0x4e   : > { %485 = vadd.xlane.f32.xlu1 %v484_v28  ;;  %v508_v28 = vadd.f32 %v2939_v5, %v2936_v4 }
  0x4f   : > { %482 = vadd.xlane.f32.xlu0 %v481_v29  ;;  %v505_v29 = vadd.f32 %v2945_v11, %v2942_v10 }
  0x52   : > { %649 = vmax.xlane.f32.xlu1 %v648_v34  ;;  %v651_v34 = vmax.f32 %v2728_v24, %v2731_v25  ;;  %v693_v25 = vmax.f32 %v2766_v38, %v2769_v39  ;;  %v2986_v38 = vld [vmem:[%s2661_s24 + $0x240] sm:$0xff]  ;;  %v2989_v39 = vld [vmem:[%s2661_s24 + $0x248] sm:$0xff] }
  0x53   : > { %625 = vmax.xlane.f32.xlu0 %v624_v35  ;;  %v627_v35 = vmax.f32 %v2734_v26, %v2737_v27  ;;  %v2970_v26 = vld [vmem:[%s2661_s24 + $0x160] sm:$0xff]  ;;  %v2973_v27 = vld [vmem:[%s2661_s24 + $0x168] sm:$0xff] }
  0x56   : > { %670 = vmax.xlane.f32.xlu1 %v669_v40  ;;  %v690_v40 = vmax.f32 %v2744_v30, %v2747_v31  ;;  %v2976_v30 = vld [vmem:[%s2661_s24 + $0xf0] sm:$0xff]  ;;  %v2979_v31 = vld [vmem:[%s2661_s24 + $0xf8] sm:$0xff] }
  0x57   : > { %667 = vmax.xlane.f32.xlu0 %v666_v41  ;;  %v672_v41 = vmax.f32 %v2750_v32, %v2753_v33  ;;  %v427_v32 = vadd.f32 %v2973_v27, %v2970_v26  ;;  %v406_v33 = vadd.f32 %v2979_v31, %v2976_v30 }
  0x5a   : > { %404 = vadd.xlane.f32.xlu1 %v403_v14  ;;  %v2960_v14 = vld [vmem:[%s2661_s24 + $0x70] sm:$0xff] }
  0x5b   : > { %380 = vadd.xlane.f32.xlu0 %v379_v15  ;;  %v2963_v15 = vld [vmem:[%s2661_s24 + $0x78] sm:$0xff] }
  0x5c   : > { %v382_v24 = vadd.f32 %v2963_v15, %v2960_v14 }
  0x5e   : > { %446 = vadd.xlane.f32.xlu1 %v445_v52  ;;  %v2992_v52 = vld [vmem:[%s2661_s24 + $0x1d0] sm:$0xff] }
  0x5f   : > { %425 = vadd.xlane.f32.xlu0 %v424_v53  ;;  %v2995_v53 = vld [vmem:[%s2661_s24 + $0x1d8] sm:$0xff] }
  0x62   : > { %488 = vadd.xlane.f32.xlu1 %v487_v62  ;;  %v469_v62 = vadd.f32 %v2989_v39, %v2986_v38 }
  0x63   : > { %467 = vadd.xlane.f32.xlu0 %v466_v63  ;;  %v448_v63 = vadd.f32 %v2995_v53, %v2992_v52 }
  0x66   : > { %509 = vadd.xlane.f32.xlu1 %v508_v28  ;;  %v3002_v28 = vld [vmem:[%s2661_s24 + $0x320] sm:$0xff] }
  0x67   : > { %506 = vadd.xlane.f32.xlu0 %v505_v29  ;;  %4180 = vst [vmem:[#allocation2_spill] sm:$0xff] %v3002_v28  ;;  %v3005_v29 = vld [vmem:[%s2661_s24 + $0x328] sm:$0xff] }
  0x68   : > { %4181 = vst [vmem:[#allocation3_spill] sm:$0xff] %v3005_v29 }
  0x6a   : > { %652 = vmax.xlane.f32.xlu1 %v651_v34  ;;  %v3008_v34 = vld [vmem:[%s2661_s24 + $0x2b0] sm:$0xff] }
  0x6b   : > { %628 = vmax.xlane.f32.xlu0 %v627_v35  ;;  %v3011_v35 = vld [vmem:[%s2661_s24 + $0x2b8] sm:$0xff] }
  0x6e   : > { %691 = vmax.xlane.f32.xlu1 %v690_v40  ;;  %v511_v40 = vadd.f32 %v3005_v29, %v3002_v28  ;;  %v654_v28 = vmax.f32 %v2782_v44, %v2785_v45  ;;  %v630_v29 = vmax.f32 %v2760_v36, %v2763_v37  ;;  %v717_v44 = vmax.f32 %v2808_v54, %v2811_v55  ;;  %v3046_v37 = vld [vmem:[%s2661_s24 + $0x1e0] sm:$0xff]  ;;  %v3049_v45 = vld [vmem:[%s2661_s24 + $0x1e8] sm:$0xff]  ;;  %v3068_v54 = vld [vmem:[%s2661_s24 + $0x250] sm:$0xff] }
  0x6f   : > { %673 = vmax.xlane.f32.xlu0 %v672_v41  ;;  %v490_v41 = vadd.f32 %v3011_v35, %v3008_v34  ;;  %v714_v36 = vmax.f32 %v2792_v48, %v2795_v49  ;;  %v3062_v48 = vld [vmem:[%s2661_s24 + $0x2c0] sm:$0xff]  ;;  %v3065_v49 = vld [vmem:[%s2661_s24 + $0x2c8] sm:$0xff]  ;;  %4182 = vst [vmem:[#allocation4_spill] sm:$0xff] %v3068_v54  ;;  %v3071_v55 = vld [vmem:[%s2661_s24 + $0x258] sm:$0xff] }
  0x72   : > { %383 = vadd.xlane.f32.xlu1 %v382_v24  ;;  %v3018_v24 = vld [vmem:[%s2661_s24 + $0x390] sm:$0xff] }
  0x73   : > { %694 = vmax.xlane.f32.xlu0 %v693_v25  ;;  %v3021_v25 = vld [vmem:[%s2661_s24 + $0x398] sm:$0xff] }
  0x76   : > { %428 = vadd.xlane.f32.xlu1 %v427_v32  ;;  %v3024_v32 = vld [vmem:[%s2661_s24 + $0x380] sm:$0xff] }
  0x77   : > { %407 = vadd.xlane.f32.xlu0 %v406_v33  ;;  %v3027_v33 = vld [vmem:[%s2661_s24 + $0x388] sm:$0xff] }
  0x7a   : > { %470 = vadd.xlane.f32.xlu1 %v469_v62  ;;  %v532_v62 = vadd.f32 %v3021_v25, %v3018_v24 }
  0x7b   : > { %449 = vadd.xlane.f32.xlu0 %v448_v63  ;;  %v529_v63 = vadd.f32 %v3027_v33, %v3024_v32 }
  0x7e   : > { %512 = vadd.xlane.f32.xlu1 %v511_v40  ;;  %v696_v40 = vmax.f32 %v2798_v50, %v2801_v51  ;;  %v3052_v50 = vld [vmem:[%s2661_s24 + $0x170] sm:$0xff]  ;;  %v3055_v51 = vld [vmem:[%s2661_s24 + $0x178] sm:$0xff] }
  0x7f   : > { %491 = vadd.xlane.f32.xlu0 %v490_v41  ;;  %v675_v41 = vmax.f32 %v2776_v42, %v2779_v43  ;;  %v451_v42 = vadd.f32 %v3049_v45, %v3046_v37  ;;  %v430_v43 = vadd.f32 %v3055_v51, %v3052_v50 }
  0x82   : > { %533 = vadd.xlane.f32.xlu1 %v532_v62  ;;  %v3078_v62 = vld [vmem:[%s2661_s24 + $0x3a0] sm:$0xff] }
  0x83   : > { %530 = vadd.xlane.f32.xlu0 %v529_v63  ;;  %4183 = vst [vmem:[#allocation5_spill] sm:$0xff] %v3078_v62  ;;  %v3081_v63 = vld [vmem:[%s2661_s24 + $0x3a8] sm:$0xff] }
  0x84   : > { %4184 = vst [vmem:[#allocation6_spill] sm:$0xff] %v3081_v63 }
  0x86   : > { %655 = vmax.xlane.f32.xlu1 %v654_v28  ;;  %v493_v28 = vadd.f32 %v3065_v49, %v3062_v48 }
  0x87   : > { %631 = vmax.xlane.f32.xlu0 %v630_v29  ;;  %v472_v29 = vadd.f32 %v3071_v55, %v3068_v54  ;;  %v874_v54 = vlaneseq }
  0x8a   : > { %697 = vmax.xlane.f32.xlu1 %v696_v40  ;;  %v3084_v40 = vld [vmem:[%s2661_s24 + $0x330] sm:$0xff] }
  0x8b   : > { %676 = vmax.xlane.f32.xlu0 %v675_v41  ;;  %4185 = vst [vmem:[#allocation7_spill] sm:$0xff] %v3084_v40  ;;  %v3087_v41 = vld [vmem:[%s2661_s24 + $0x338] sm:$0xff] }
  0x8c   : > { %4186 = vst [vmem:[#allocation8_spill] sm:$0xff] %v3087_v41 }
  0x8e   : > { %718 = vmax.xlane.f32.xlu1 %v717_v44  ;;  %v535_v44 = vadd.f32 %v3081_v63, %v3078_v62  ;;  %v3155_v62 = vld [vmem:[%s2661_s24 + $0x3b8] sm:$0xff]  ;;  %v3159_v63 = vld [vmem:[%s2661_s24 + $0x340] sm:$0xff] }
  0x8f   : > { %715 = vmax.xlane.f32.xlu0 %v714_v36  ;;  %v514_v36 = vadd.f32 %v3087_v41, %v3084_v40  ;;  %v3101_v40 = vand.u32 127, %v874_v54  ;;  %4195 = vst [vmem:[#allocation17_spill] sm:$0xff] %v3155_v62 }
  0x92   : > { %452 = vadd.xlane.f32.xlu1 %v451_v42  ;;  %v657_v42 = vmax.f32 %v2838_v2, %v2841_v3  ;;  %v738_v2 = vmax.f32 %v2870_v22, %v2873_v23  ;;  %v880_v3 = vadd.s32 4294967288, %v3101_v40 }
  0x93   : > { %431 = vadd.xlane.f32.xlu0 %v430_v43  ;;  %v633_v43 = vmax.f32 %v2822_v60, %v2825_v61  ;;  %v720_v61 = vmax.f32 %v2848_v6, %v2851_v7  ;;  %v887_v6 = vadd.s32 4294967280, %v3101_v40 }
  0x96   : > { %494 = vadd.xlane.f32.xlu1 %v493_v28  ;;  %v699_v28 = vmax.f32 %v2854_v8, %v2857_v9  ;;  %v3111_v8 = vld [vmem:[%s2661_s24 + $0x1f0] sm:$0xff] }
  0x97   : > { %473 = vadd.xlane.f32.xlu0 %v472_v29  ;;  %v678_v29 = vmax.f32 %v2832_v0, %v2835_v1  ;;  %4188 = vst [vmem:[#allocation10_spill] sm:$0xff] %v3111_v8  ;;  %v3114_v0 = vld [vmem:[%s2661_s24 + $0x1f8] sm:$0xff] }
  0x98   : > { %4189 = vst [vmem:[#allocation11_spill] sm:$0xff] %v3114_v0 }
  0x9a   : > { %536 = vadd.xlane.f32.xlu1 %v535_v44  ;;  %v3103_v44 = vshrl.u32 %v874_v54, 7  ;;  %v454_v54 = vadd.f32 %v3114_v0, %v3111_v8 }
  0x9b   : > { %515 = vadd.xlane.f32.xlu0 %v514_v36 }
  0x9c   : > { %4187 = vst [vmem:[#allocation9_spill] sm:$0xff] %v3103_v44  ;;  %v3118_v9 = vsub.s32 %v3101_v40, %v3103_v44  ;;  %v3121_v23 = vsub.s32 %v880_v3, %v3103_v44  ;;  %v3135_v3 = vld [vmem:[%s2661_s24 + $0x260] sm:$0xff] }
  0x9d   : > { %4192 = vst [vmem:[#allocation14_spill] sm:$0xff] %v3135_v3 }
  0x9e   : > { %658 = vmax.xlane.f32.xlu1 %v657_v42  ;;  %v741_v42 = vmax.f32 %v2864_v16, %v2867_v17  ;;  %v3143_v17 = vsub.s32 %v887_v6, %v3103_v44 }
  0x9f   : > { %634 = vmax.xlane.f32.xlu0 %v633_v43  ;;  %v3129_v43 = vld [vmem:[%s2661_s24 + $0x2d0] sm:$0xff] }
  0xa0   : > { %4190 = vst [vmem:[#allocation12_spill] sm:$0xff] %v3129_v43 }
  0xa2   : > { %700 = vmax.xlane.f32.xlu1 %v699_v28  ;;  %v3132_v28 = vld [vmem:[%s2661_s24 + $0x2d8] sm:$0xff] }
  0xa3   : > { %679 = vmax.xlane.f32.xlu0 %v678_v29  ;;  %v387_v60 = vpop.xlane.xlu1 %386  ;;  %4191 = vst [vmem:[#allocation13_spill] sm:$0xff] %v3132_v28 }
  0xa4   : > { %v363_v1 = vpop.xlane.xlu0 %362  ;;  %v562_v22 = vmul.f32 0.00390625, %v387_v60  ;;  %v3138_v60 = vld [vmem:[%s2661_s24 + $0x268] sm:$0xff] }
  0xa5   : > { %v554_v7 = vmul.f32 0.00390625, %v363_v1  ;;  %4193 = vst [vmem:[#allocation15_spill] sm:$0xff] %v3138_v60  ;;  %v496_v1 = vadd.f32 %v3132_v28, %v3129_v43  ;;  %v3162_v43 = vld [vmem:[%s2661_s24 + $0x348] sm:$0xff] }
  0xa6   : > { %739 = vmax.xlane.f32.xlu1 %v738_v2 }
  0xa7   : > { %721 = vmax.xlane.f32.xlu0 %v720_v61  ;;  %v390_v36 = vpop.xlane.xlu1 %389  ;;  %v932_v61 = vrot.slane %v562_v22, %v3118_v9  ;;  %v3152_v22 = vld [vmem:[%s2661_s24 + $0x3b0] sm:$0xff] }
  0xa8   : > { %v563_v29 = vmul.f32 0.00390625, %v390_v36  ;;  %v366_v2 = vpop.xlane.xlu0 %365  ;;  %v879_v36 = vrot.slane %v554_v7, %v3118_v9  ;;  %4194 = vst [vmem:[#allocation16_spill] sm:$0xff] %v3152_v22  ;;  %v538_v28 = vadd.f32 %v3155_v62, %v3152_v22 }
  0xa9   : > { %v555_v8 = vmul.f32 0.00390625, %v366_v2  ;;  %v475_v2 = vadd.f32 %v3138_v60, %v3135_v3  ;;  %v894_v3 = vadd.s32 4294967272, %v3101_v40 }
  0xaa   : > { %v936_v16 = vrot.slane %v563_v29, %v3121_v23  ;;  %455 = vadd.xlane.f32.xlu1 %v454_v54 }
  0xab   : > { %v884_v0 = vrot.slane %v555_v8, %v3121_v23  ;;  %742 = vmax.xlane.f32.xlu0 %v741_v42  ;;  %v393_v41 = vpop.xlane.xlu1 %392  ;;  %v3176_v22 = vsub.s32 %v894_v3, %v3103_v44  ;;  %v702_v3 = vmax.f32 %v2904_v18, %v2907_v19  ;;  %v744_v18 = vmax.f32 %v2920_v56, %v2923_v57 }
  0xac   : > { %v937_v54 = vsel %vm885_vm0, %v936_v16, %v932_v61  ;;  %v564_v6 = vmul.f32 0.00390625, %v393_v41  ;;  %v369_v29 = vpop.xlane.xlu0 %368  ;;  %v517_v16 = vadd.f32 %v3162_v43, %v3159_v63  ;;  %v765_v57 = vmax.f32 %v2936_v4, %v2939_v5  ;;  %v3219_v5 = vld [vmem:[%s2661_s24 + $0x270] sm:$0xff] }
  0xad   : > { %v886_v7 = vsel %vm885_vm0, %v884_v0, %v879_v36  ;;  %v556_v8 = vmul.f32 0.00390625, %v369_v29 }
  0xae   : > { %v941_v42 = vrot.slane %v564_v6, %v3143_v17  ;;  %497 = vadd.xlane.f32.xlu1 %v496_v1 }
  0xaf   : > { %v891_v61 = vrot.slane %v556_v8, %v3143_v17  ;;  %476 = vadd.xlane.f32.xlu0 %v475_v2  ;;  %v414_v41 = vpop.xlane.xlu1 %413  ;;  %v660_v2 = vmax.f32 %v2888_v46, %v2891_v47  ;;  %v901_v46 = vadd.s32 4294967264, %v3101_v40 }
  0xb0   : > { %v942_v60 = vsel %vm892_vm1, %v941_v42, %v937_v54  ;;  %v571_v0 = vmul.f32 0.00390625, %v414_v41  ;;  %v411_v36 = vpop.xlane.xlu0 %410  ;;  %v636_v54 = vmax.f32 %v2894_v12, %v2897_v13  ;;  %v681_v12 = vmax.f32 %v2910_v20, %v2913_v21 }
  0xb1   : > { %v893_v29 = vsel %vm892_vm1, %v891_v61, %v886_v7  ;;  %v570_v6 = vmul.f32 0.00390625, %v411_v36  ;;  %v723_v20 = vmax.f32 %v2926_v58, %v2929_v59  ;;  %v762_v59 = vmax.f32 %v2942_v10, %v2945_v11 }
  0xb2   : > { %v975_v1 = vrot.slane %v571_v0, %v3121_v23  ;;  %539 = vadd.xlane.f32.xlu1 %v538_v28 }
  0xb3   : > { %v971_v8 = vrot.slane %v570_v6, %v3118_v9  ;;  %518 = vadd.xlane.f32.xlu0 %v517_v16  ;;  %v396_v62 = vpop.xlane.xlu1 %395  ;;  %v3194_v6 = vsub.s32 %v901_v46, %v3103_v44 }
  0xb4   : > { %v565_v42 = vmul.f32 0.00390625, %v396_v62  ;;  %v372_v41 = vpop.xlane.xlu0 %371 }
  0xb5   : > { %v976_v7 = vsel %vm885_vm0, %v975_v1, %v971_v8  ;;  %v557_v61 = vmul.f32 0.00390625, %v372_v41  ;;  %v3210_v41 = vld [vmem:[%s2661_s24 + $0x2e0] sm:$0xff] }
  0xb6   : > { %v946_v28 = vrot.slane %v565_v42, %v3176_v22  ;;  %661 = vmax.xlane.f32.xlu1 %v660_v2 }
  0xb7   : > { %v898_v47 = vrot.slane %v557_v61, %v3176_v22  ;;  %637 = vmax.xlane.f32.xlu0 %v636_v54  ;;  %v435_v16 = vpop.xlane.xlu1 %434 }
  0xb8   : > { %v947_v13 = vsel %vm899_vm2, %v946_v28, %v942_v60  ;;  %v417_v62 = vpop.xlane.xlu0 %416  ;;  %v578_v19 = vmul.f32 0.00390625, %v435_v16 }
  0xb9   : > { %v900_v0 = vsel %vm899_vm2, %v898_v47, %v893_v29  ;;  %v572_v36 = vmul.f32 0.00390625, %v417_v62 }
  0xba   : > { %703 = vmax.xlane.f32.xlu1 %v702_v3  ;;  %v1010_v54 = vrot.slane %v578_v19, %v3118_v9  ;;  %v3222_v3 = vld [vmem:[%s2661_s24 + $0x278] sm:$0xff] }
  0xbb   : > { %v980_v1 = vrot.slane %v572_v36, %v3143_v17  ;;  %682 = vmax.xlane.f32.xlu0 %v681_v12  ;;  %v375_v2 = vpop.xlane.xlu1 %374  ;;  %v478_v62 = vadd.f32 %v3222_v3, %v3219_v5  ;;  %v3235_v36 = vld [vmem:[%s2661_s24 + $0x3c8] sm:$0xff] }
  0xbc   : > { %v558_v21 = vmul.f32 0.00390625, %v375_v2  ;;  %v438_v60 = vpop.xlane.xlu0 %437  ;;  %v3242_v2 = vld [vmem:[%s2661_s24 + $0x358] sm:$0xff] }
  0xbd   : > { %v981_v29 = vsel %vm892_vm1, %v980_v1, %v976_v7  ;;  %v579_v8 = vmul.f32 0.00390625, %v438_v60  ;;  %v3213_v7 = vld [vmem:[%s2661_s24 + $0x2e8] sm:$0xff]  ;;  %v3239_v1 = vld [vmem:[%s2661_s24 + $0x350] sm:$0xff] }
  0xbe   : > { %v905_v56 = vrot.slane %v558_v21, %v3194_v6  ;;  %745 = vmax.xlane.f32.xlu1 %v744_v18  ;;  %v499_v47 = vadd.f32 %v3213_v7, %v3210_v41 }
  0xbf   : > { %v1014_v42 = vrot.slane %v579_v8, %v3121_v23  ;;  %724 = vmax.xlane.f32.xlu0 %v723_v20  ;;  %v420_v58 = vpop.xlane.xlu1 %419 }
  0xc0   : > { %v3216_v61 = vsel %vm906_vm3, %v905_v56, %v900_v0  ;;  %v573_v28 = vmul.f32 0.00390625, %v420_v58  ;;  %v399_v4 = vpop.xlane.xlu0 %398  ;;  %v3232_v0 = vld [vmem:[%s2661_s24 + $0x3c0] sm:$0xff] }
  0xc1   : > { %v1015_v46 = vsel %vm885_vm0, %v1014_v42, %v1010_v54  ;;  %v566_v10 = vmul.f32 0.00390625, %v399_v4  ;;  %v541_v60 = vadd.f32 %v3235_v36, %v3232_v0 }
  0xc2   : > { %v985_v11 = vrot.slane %v573_v28, %v3176_v22  ;;  %766 = vmax.xlane.f32.xlu1 %v765_v57 }
  0xc3   : > { %v951_v16 = vrot.slane %v566_v10, %v3194_v6  ;;  %763 = vmax.xlane.f32.xlu0 %v762_v59  ;;  %v459_v12 = vpop.xlane.xlu1 %458  ;;  %v908_v59 = vadd.s32 4294967256, %v3101_v40 }
  0xc4   : > { %v986_v18 = vsel %vm899_vm2, %v985_v11, %v981_v29  ;;  %v441_v19 = vpop.xlane.xlu0 %440  ;;  %v586_v8 = vmul.f32 0.00390625, %v459_v12  ;;  %v520_v29 = vadd.f32 %v3242_v2, %v3239_v1  ;;  %v639_v11 = vmax.f32 %v2960_v14, %v2963_v15 }
  0xc5   : > { %v952_v20 = vsel %vm906_vm3, %v951_v16, %v947_v13  ;;  %v580_v21 = vmul.f32 0.00390625, %v441_v19  ;;  %v663_v13 = vmax.f32 %v2976_v30, %v2979_v31  ;;  %v3264_v30 = vsub.s32 %v908_v59, %v3103_v44 }
  0xc6   : > { %500 = vadd.xlane.f32.xlu1 %v499_v47  ;;  %v1049_v28 = vrot.slane %v586_v8, %v3118_v9  ;;  %v705_v31 = vmax.f32 %v2992_v52, %v2995_v53  ;;  %v684_v14 = vmax.f32 %v2970_v26, %v2973_v27  ;;  %v747_v52 = vmax.f32 %v3008_v34, %v3011_v35 }
  0xc7   : > { %v1019_v56 = vrot.slane %v580_v21, %v3143_v17  ;;  %479 = vadd.xlane.f32.xlu0 %v478_v62  ;;  %v620_v57 = vpop.xlane.xlu1 %619  ;;  %v726_v27 = vmax.f32 %v2986_v38, %v2989_v39  ;;  %v786_v34 = vmax.f32 %v3024_v32, %v3027_v33  ;;  %v3294_v39 = vld [vmem:[%s2661_s24 + $0x2f0] sm:$0xff] }
  0xc8   : > { %v462_v54 = vpop.xlane.xlu0 %461 }
  0xc9   : > { %v3251_v42 = vsel %vm892_vm1, %v1019_v56, %v1015_v46  ;;  %v587_v58 = vmul.f32 0.00390625, %v462_v54  ;;  %v1283_v46 = vrot.slane %v620_v57, %v3118_v9 }
  0xca   : > { %542 = vadd.xlane.f32.xlu1 %v541_v60 }
  0xcb   : > { %v1053_v4 = vrot.slane %v587_v58, %v3121_v23  ;;  %521 = vadd.xlane.f32.xlu0 %v520_v29  ;;  %v644_v10 = vpop.xlane.xlu1 %643 }
  0xcc   : > { %v623_v47 = vpop.xlane.xlu0 %622  ;;  %v1322_v60 = vrot.slane %v644_v10, %v3118_v9 }
  0xcd   : > { %v1054_v16 = vsel %vm885_vm0, %v1053_v4, %v1049_v28  ;;  %v1287_v12 = vrot.slane %v623_v47, %v3121_v23  ;;  %v4196_v28 = vld [vmem:[#allocation3_spill] sm:$0xff]  ;;  %v4197_v4 = vld [vmem:[#allocation2_spill] sm:$0xff] }
  0xce   : > { %664 = vmax.xlane.f32.xlu1 %v663_v13  ;;  %v768_v38 = vmax.f32 %v4197_v4, %v4196_v28 }
  0xcf   : > { %v3269_v62 = vsel %vm885_vm0, %v1287_v12, %v1283_v46  ;;  %640 = vmax.xlane.f32.xlu0 %v639_v11  ;;  %v378_v19 = vpop.xlane.xlu1 %377 }
  0xd0   : > { %v559_v15 = vmul.f32 0.00390625, %v378_v19  ;;  %v647_v21 = vpop.xlane.xlu0 %646 }
  0xd1   : > { %v1326_v8 = vrot.slane %v647_v21, %v3121_v23 }
  0xd2   : > { %v912_v56 = vrot.slane %v559_v15, %v3264_v30  ;;  %706 = vmax.xlane.f32.xlu1 %v705_v31  ;;  %v3315_v15 = vld [vmem:[%s2661_s24 + $0x3d8] sm:$0xff] }
  0xd3   : > { %v3279_v53 = vsel %vm885_vm0, %v1326_v8, %v1322_v60  ;;  %685 = vmax.xlane.f32.xlu0 %v684_v14  ;;  %v423_v26 = vpop.xlane.xlu1 %422  ;;  %v3312_v14 = vld [vmem:[%s2661_s24 + $0x3d0] sm:$0xff]  ;;  %v3321_v8 = vld [vmem:[%s2661_s24 + $0x360] sm:$0xff] }
  0xd4   : > { %v3285_v57 = vsel %vm913_vm4, %v912_v56, %v3216_v61  ;;  %v574_v29 = vmul.f32 0.00390625, %v423_v26  ;;  %v402_v54 = vpop.xlane.xlu0 %401  ;;  %v3297_v61 = vld [vmem:[%s2661_s24 + $0x2f8] sm:$0xff]  ;;  %v3324_v56 = vld [vmem:[%s2661_s24 + $0x368] sm:$0xff] }
  0xd5   : > { %v567_v58 = vmul.f32 0.00390625, %v402_v54  ;;  %v502_v12 = vadd.f32 %v3297_v61, %v3294_v39 }
  0xd6   : > { %v990_v13 = vrot.slane %v574_v29, %v3194_v6  ;;  %748 = vmax.xlane.f32.xlu1 %v747_v52  ;;  %v523_v29 = vadd.f32 %v3324_v56, %v3321_v8 }
  0xd7   : > { %v956_v35 = vrot.slane %v567_v58, %v3264_v30  ;;  %727 = vmax.xlane.f32.xlu0 %v726_v27  ;;  %v465_v59 = vpop.xlane.xlu1 %464  ;;  %v708_v58 = vmax.f32 %v3046_v37, %v3049_v45  ;;  %v4198_v37 = vld [vmem:[#allocation4_spill] sm:$0xff] }
  0xd8   : > { %v3300_v10 = vsel %vm906_vm3, %v990_v13, %v986_v18  ;;  %v588_v11 = vmul.f32 0.00390625, %v465_v59  ;;  %v444_v47 = vpop.xlane.xlu0 %443  ;;  %v789_v18 = vmax.f32 %v3018_v24, %v3021_v25  ;;  %v544_v25 = vadd.f32 %v3315_v15, %v3312_v14 }
  0xd9   : > { %v3303_v32 = vsel %vm913_vm4, %v956_v35, %v952_v20  ;;  %v581_v33 = vmul.f32 0.00390625, %v444_v47  ;;  %v750_v59 = vmax.f32 %v3062_v48, %v3065_v49  ;;  %v729_v45 = vmax.f32 %v4198_v37, %v3071_v55  ;;  %v3370_v49 = vld [vmem:[%s2661_s24 + $0x370] sm:$0xff]  ;;  %v3373_v55 = vld [vmem:[%s2661_s24 + $0x378] sm:$0xff] }
  0xda   : > { %v1058_v46 = vrot.slane %v588_v11, %v3143_v17  ;;  %787 = vmax.xlane.f32.xlu1 %v786_v34  ;;  %v687_v34 = vmax.f32 %v3052_v50, %v3055_v51  ;;  %v4200_v11 = vld [vmem:[#allocation5_spill] sm:$0xff]  ;;  %v4201_v51 = vld [vmem:[#allocation8_spill] sm:$0xff]  ;;  %v774_v37 = vmax.f32 %v3159_v63, %v3162_v43  ;;  %v915_v63 = vadd.s32 4294967248, %v3101_v40 }
  0xdb   : > { %v1024_v31 = vrot.slane %v581_v33, %v3176_v22  ;;  %769 = vmax.xlane.f32.xlu0 %v768_v38  ;;  %v486_v19 = vpop.xlane.xlu1 %485  ;;  %v4199_v38 = vld [vmem:[#allocation6_spill] sm:$0xff]  ;;  %v4202_v33 = vld [vmem:[#allocation7_spill] sm:$0xff] }
  0xdc   : > { %v3318_v20 = vsel %vm892_vm1, %v1058_v46, %v1054_v16  ;;  %v595_v21 = vmul.f32 0.00390625, %v486_v19  ;;  %v483_v60 = vpop.xlane.xlu0 %482  ;;  %v792_v47 = vmax.f32 %v4200_v11, %v4199_v38  ;;  %v771_v46 = vmax.f32 %v4202_v33, %v4201_v51  ;;  %v4207_v38 = vld [vmem:[#allocation13_spill] sm:$0xff]  ;;  %v4208_v11 = vld [vmem:[#allocation12_spill] sm:$0xff] }
  0xdd   : > { %v3328_v52 = vsel %vm899_vm2, %v1024_v31, %v3251_v42  ;;  %v594_v26 = vmul.f32 0.00390625, %v483_v60  ;;  %v3365_v31 = vld [vmem:[%s2661_s24 + $0x3e8] sm:$0xff]  ;;  %v359_v51 = vld [vmem:[%s2661_s24 + $0x3f0] sm:$0xff]  ;;  %v360_v33 = vld [vmem:[%s2661_s24 + $0x3f8] sm:$0xff] }
  0xde   : > { %v1092_v24 = vrot.slane %v595_v21, %v3121_v23  ;;  %503 = vadd.xlane.f32.xlu1 %v502_v12  ;;  %v3362_v12 = vld [vmem:[%s2661_s24 + $0x3e0] sm:$0xff]  ;;  %v526_v21 = vadd.f32 %v3373_v55, %v3370_v49 }
  0xdf   : > { %v1088_v16 = vrot.slane %v594_v26, %v3118_v9  ;;  %790 = vmax.xlane.f32.xlu0 %v789_v18  ;;  %v3334_v27 = vpop.xlane.xlu1 %649  ;;  %v547_v19 = vadd.f32 %v3365_v31, %v3362_v12  ;;  %v4203_v26 = vld [vmem:[#allocation15_spill] sm:$0xff] }
  0xe0   : > { %v3338_v54 = vpop.xlane.xlu0 %625 }
  0xe1   : > { %v3341_v42 = vsel %vm885_vm0, %v1092_v24, %v1088_v16  ;;  %v4204_v24 = vld [vmem:[#allocation14_spill] sm:$0xff] }
  0xe2   : > { %545 = vadd.xlane.f32.xlu1 %v544_v25  ;;  %v732_v25 = vmax.f32 %v4204_v24, %v4203_v26  ;;  %v4209_v26 = vld [vmem:[#allocation17_spill] sm:$0xff]  ;;  %v4210_v24 = vld [vmem:[#allocation16_spill] sm:$0xff] }
  0xe3   : > { %524 = vadd.xlane.f32.xlu0 %v523_v29  ;;  %v3345_v13 = vpop.xlane.xlu1 %670  ;;  %v4205_v29 = vld [vmem:[#allocation11_spill] sm:$0xff] }
  0xe4   : > { %v3349_v35 = vpop.xlane.xlu0 %667 }
  0xe6   : > { %709 = vmax.xlane.f32.xlu1 %v708_v58  ;;  %v4206_v58 = vld [vmem:[#allocation10_spill] sm:$0xff] }
  0xe7   : > { %688 = vmax.xlane.f32.xlu0 %v687_v34  ;;  %v405_v28 = vpop.xlane.xlu1 %404  ;;  %v711_v34 = vmax.f32 %v4206_v58, %v4205_v29  ;;  %v922_v29 = vadd.s32 4294967240, %v3101_v40  ;;  %v756_v58 = vmax.f32 %v3210_v41, %v3213_v7  ;;  %v798_v41 = vmax.f32 %v3232_v0, %v3235_v36 }
  0xe8   : > { %v381_v4 = vpop.xlane.xlu0 %380 }
  0xea   : > { %751 = vmax.xlane.f32.xlu1 %v750_v59 }
  0xeb   : > { %730 = vmax.xlane.f32.xlu0 %v729_v45  ;;  %v3357_v50 = vpop.xlane.xlu1 %446 }
  0xec   : > { %v3367_v48 = vpop.xlane.xlu0 %425 }
  0xee   : > { %793 = vmax.xlane.f32.xlu1 %v792_v47  ;;  %v753_v47 = vmax.f32 %v4208_v11, %v4207_v38  ;;  %v3414_v38 = vsub.s32 %v915_v63, %v3103_v44  ;;  %v568_v11 = vmul.f32 0.00390625, %v405_v28  ;;  %v780_v63 = vmax.f32 %v3321_v8, %v3324_v56 }
  0xef   : > { %772 = vmax.xlane.f32.xlu0 %v771_v46  ;;  %v3377_v18 = vpop.xlane.xlu1 %488  ;;  %v783_v56 = vmax.f32 %v3370_v49, %v3373_v55 }
  0xf0   : > { %v3381_v60 = vpop.xlane.xlu0 %467 }
  0xf2   : > { %548 = vadd.xlane.f32.xlu1 %v547_v19  ;;  %v550_v19 = vadd.f32 %v360_v33, %v359_v51 }
  0xf3   : > { %527 = vadd.xlane.f32.xlu0 %v526_v21  ;;  %v3385_v16 = vpop.xlane.xlu1 %509 }
  0xf4   : > { %v3389_v59 = vpop.xlane.xlu0 %506 }
  0xf6   : > { %733 = vmax.xlane.f32.xlu1 %v732_v25  ;;  %v795_v25 = vmax.f32 %v4210_v24, %v4209_v26  ;;  %v3419_v24 = vsub.s32 %v922_v29, %v3103_v44 }
  0xf7   : > { %712 = vmax.xlane.f32.xlu0 %v711_v34  ;;  %v3393_v45 = vpop.xlane.xlu1 %652 }
  0xf8   : > { %v3399_v46 = vpop.xlane.xlu0 %628 }
  0xfa   : > { %775 = vmax.xlane.f32.xlu1 %v774_v37  ;;  %v735_v37 = vmax.f32 %v3219_v5, %v3222_v3  ;;  %v777_v5 = vmax.f32 %v3239_v1, %v3242_v2  ;;  %v961_v3 = vrot.slane %v568_v11, %v3414_v38  ;;  %v759_v1 = vmax.f32 %v3294_v39, %v3297_v61 }
  0xfb   : > { %754 = vmax.xlane.f32.xlu0 %v753_v47  ;;  %v3401_v21 = vpop.xlane.xlu1 %691  ;;  %v560_v47 = vmul.f32 0.00390625, %v381_v4  ;;  %v801_v61 = vmax.f32 %v3312_v14, %v3315_v15  ;;  %v1599_v14 = vld [vmem:[%s4158_s1] sm:$0xff]  ;;  %v1600_v15 = vld [vmem:[%s4158_s1 + $0x8] sm:$0xff] }
  0xfc   : > { %v3406_v43 = vpop.xlane.xlu0 %673  ;;  %v962_v2 = vsel %vm920_vm5, %v961_v3, %v3303_v32  ;;  %v575_v3 = vmul.f32 0.00390625, %v3367_v48  ;;  %v1605_v48 = vld [vmem:[%s4158_s1 + $0x30] sm:$0xff] }
  0xfd   : > { %v919_v28 = vrot.slane %v560_v47, %v3414_v38  ;;  %v804_v47 = vmax.f32 %v3362_v12, %v3365_v31  ;;  %v1601_v12 = vld [vmem:[%s4158_s1 + $0x10] sm:$0xff]  ;;  %v1602_v31 = vld [vmem:[%s4158_s1 + $0x18] sm:$0xff] }
  0xfe   : > { %551 = vadd.xlane.f32.xlu1 %v550_v19 }
  0xff   : > { %796 = vmax.xlane.f32.xlu0 %v795_v25  ;;  %v384_v34 = vpop.xlane.xlu1 %383  ;;  %v921_v29 = vsel %vm920_vm5, %v919_v28, %v3285_v57  ;;  %v807_v57 = vmax.f32 %v359_v51, %v360_v33  ;;  %v2451_v51 = vpack.c.bf16 %v1600_v15, %v1599_v14 }
 0x100   : > { %v3416_v26 = vpop.xlane.xlu0 %694  ;;  %v561_v40 = vmul.f32 0.00390625, %v384_v34 }
 0x101   : > { %2452 = vmatprep.subr.bf16.mxu0 %v2451_v51 }
 0x102   : > { %757 = vmax.xlane.f32.xlu1 %v756_v58  ;;  %v926_v19 = vrot.slane %v561_v40, %v3419_v24  ;;  %2454 = vmatpush3.bf16.msra.mxu0 %v2451_v51 }
 0x103   : > { %736 = vmax.xlane.f32.xlu0 %v735_v37  ;;  %v429_v7 = vpop.xlane.xlu1 %428 }
 0x104   : > { %v408_v4 = vpop.xlane.xlu0 %407  ;;  %v928_v34 = vsel %vm927_vm6, %v926_v19, %v921_v29  ;;  %v1604_v19 = vld [vmem:[%s4158_s1 + $0x28] sm:$0xff]  ;;  %v1606_v29 = vld [vmem:[%s4158_s1 + $0x38] sm:$0xff] }
 0x105   : > { %v569_v25 = vmul.f32 0.00390625, %v408_v4  ;;  %v1603_v4 = vld [vmem:[%s4158_s1 + $0x20] sm:$0xff] }
 0x106   : > { %799 = vmax.xlane.f32.xlu1 %v798_v41 }
 0x107   : > { %v966_v0 = vrot.slane %v569_v25, %v3419_v24  ;;  %778 = vmax.xlane.f32.xlu0 %v777_v5  ;;  %v3431_v36 = vpop.xlane.xlu1 %470  ;;  %v2455_v5 = vpack.c.bf16 %v1602_v31, %v1601_v12  ;;  %v576_v25 = vmul.f32 0.00390625, %v429_v7  ;;  %v2463_v7 = vpack.c.bf16 %v1606_v29, %v1605_v48 }
 0x108   : > { %v3439_v58 = vpop.xlane.xlu0 %449 }
 0x109   : > { %v967_v8 = vsel %vm927_vm6, %v966_v0, %v962_v2  ;;  %2456 = vmatprep.subr.bf16.mxu0 %v2455_v5  ;;  %v2459_v0 = vpack.c.bf16 %v1604_v19, %v1603_v4 }
 0x10a   : > { %781 = vmax.xlane.f32.xlu1 %v780_v63  ;;  %v1203_v37 = vsel %vm1202_vm7, %v967_v8, %v928_v34  ;;  %2458 = vmatpush3.bf16.msra.mxu0 %v2455_v5  ;;  %v1000_v34 = vrot.slane %v576_v25, %v3414_v38  ;;  %v582_v25 = vmul.f32 0.00390625, %v3357_v50 }
 0x10b   : > { %760 = vmax.xlane.f32.xlu0 %v759_v1  ;;  %v3446_v39 = vpop.xlane.xlu1 %512  ;;  %2460 = vmatprep.subr.bf16.mxu0 %v2459_v0  ;;  %v995_v1 = vrot.slane %v575_v3, %v3264_v30 }
 0x10c   : > { %v3450_v32 = vpop.xlane.xlu0 %491  ;;  %v1029_v29 = vrot.slane %v582_v25, %v3194_v6 }
 0x10e   : > { %784 = vmax.xlane.f32.xlu1 %v783_v56  ;;  %2462 = vmatpush3.bf16.msra.mxu0 %v2459_v0  ;;  %v583_v0 = vmul.f32 0.00390625, %v3439_v58  ;;  %v1030_v50 = vsel %vm906_vm3, %v1029_v29, %v3328_v52 }
 0x10f   : > { %802 = vmax.xlane.f32.xlu0 %v801_v61  ;;  %v3452_v11 = vpop.xlane.xlu1 %533  ;;  %2464 = vmatprep.subr.bf16.mxu0 %v2463_v7  ;;  %v996_v61 = vsel %vm913_vm4, %v995_v1, %v3300_v10 }
 0x110   : > { %v3456_v40 = vpop.xlane.xlu0 %530  ;;  %v1001_v14 = vsel %vm920_vm5, %v1000_v34, %v996_v61  ;;  %v1034_v34 = vrot.slane %v583_v0, %v3264_v30 }
 0x112   : > { %808 = vmax.xlane.f32.xlu1 %v807_v57  ;;  %2466 = vmatpush3.bf16.msra.mxu0 %v2463_v7  ;;  %v1035_v58 = vsel %vm913_vm4, %v1034_v34, %v1030_v50  ;;  %v589_v50 = vmul.f32 0.00390625, %v3381_v60  ;;  %v1331_v60 = vrot.slane %v3334_v27, %v3143_v17 }
 0x113   : > { %805 = vmax.xlane.f32.xlu0 %v804_v47  ;;  %v3458_v49 = vpop.xlane.xlu1 %655 }
 0x114   : > { %v3466_v55 = vpop.xlane.xlu0 %631 }
 0x117   : > { %v3468_v33 = vpop.xlane.xlu1 %697 }
 0x118   : > { %v3476_v41 = vpop.xlane.xlu0 %676 }
 0x11b   : > { %v3479_v28 = vpop.xlane.xlu1 %718 }
 0x11c   : > { %v3487_v63 = vpop.xlane.xlu0 %715 }
 0x11f   : > { %v453_v2 = vpop.xlane.xlu1 %452 }
 0x120   : > { %v432_v8 = vpop.xlane.xlu0 %431  ;;  %v584_v1 = vmul.f32 0.00390625, %v453_v2 }
 0x121   : > { %v577_v56 = vmul.f32 0.00390625, %v432_v8 }
 0x122   : > { %v1039_v8 = vrot.slane %v584_v1, %v3414_v38 }
 0x123   : > { %v1005_v57 = vrot.slane %v577_v56, %v3419_v24  ;;  %v3500_v47 = vpop.xlane.xlu1 %494 }
 0x124   : > { %v474_v15 = vpop.xlane.xlu0 %473 }
 0x125   : > { %v1006_v51 = vsel %vm927_vm6, %v1005_v57, %v1001_v14  ;;  %v1040_v57 = vsel %vm920_vm5, %v1039_v8, %v1035_v58  ;;  %v590_v58 = vmul.f32 0.00390625, %v3431_v36 }
 0x126   : > { %v1205_v12 = vsel %vm1204_vm8, %v1006_v51, %v1203_v37 }
 0x127   : > { %v3505_v31 = vpop.xlane.xlu1 %536 }
 0x128   : > { %v3507_v5 = vpop.xlane.xlu0 %515 }
 0x12b   : > { %v3509_v3 = vpop.xlane.xlu1 %658 }
 0x12c   : > { %v3511_v10 = vpop.xlane.xlu0 %634 }
 0x12f   : > { %v3513_v4 = vpop.xlane.xlu1 %700 }
 0x130   : > { %v3515_v19 = vpop.xlane.xlu0 %679 }
 0x133   : > { %v3519_v48 = vpop.xlane.xlu1 %739 }
 0x134   : > { %4211 = vst [vmem:[#allocation3_spill] sm:$0xff] %v3519_v48  ;;  %v3521_v37 = vpop.xlane.xlu0 %721 }
 0x137   : > { %v456_v7 = vpop.xlane.xlu1 %455 }
 0x138   : > { %v585_v56 = vmul.f32 0.00390625, %v456_v7  ;;  %v3526_v61 = vpop.xlane.xlu0 %742 }
 0x139   : > { %4212 = vst [vmem:[#allocation2_spill] sm:$0xff] %v3526_v61  ;;  %v1063_v61 = vrot.slane %v589_v50, %v3176_v22  ;;  %v1336_v50 = vrot.slane %v3393_v45, %v3176_v22  ;;  %v1346_v45 = vrot.slane %v3509_v3, %v3264_v30 }
 0x13a   : > { %v1044_v2 = vrot.slane %v585_v56, %v3419_v24 }
 0x13b   : > { %v3533_v14 = vpop.xlane.xlu1 %497  ;;  %v1064_v36 = vsel %vm899_vm2, %v1063_v61, %v3318_v20 }
 0x13c   : > { %v1045_v51 = vsel %vm927_vm6, %v1044_v2, %v1040_v57  ;;  %v477_v25 = vpop.xlane.xlu0 %476  ;;  %v591_v2 = vmul.f32 0.00390625, %v474_v15 }
 0x13d   : > { %v1207_v0 = vsel %vm1206_vm9, %v1045_v51, %v1205_v12  ;;  %v592_v57 = vmul.f32 0.00390625, %v477_v25  ;;  %v1292_v25 = vrot.slane %v3338_v54, %v3143_v17  ;;  %v1302_v54 = vrot.slane %v3466_v55, %v3194_v6 }
 0x13f   : > { %v3537_v1 = vpop.xlane.xlu1 %539  ;;  %v1293_v55 = vsel %vm892_vm1, %v1292_v25, %v3269_v62 }
 0x140   : > { %v3539_v7 = vpop.xlane.xlu0 %518 }
 0x143   : > { %v662_v44 = vpop.xlane.xlu1 %661 }
 0x144   : > { %v638_v52 = vpop.xlane.xlu0 %637 }
 0x145   : > { %v1312_v3 = vrot.slane %v638_v52, %v3414_v38 }
 0x147   : > { %v3541_v29 = vpop.xlane.xlu1 %703 }
 0x148   : > { %4213 = vst [vmem:[#allocation4_spill] sm:$0xff] %v3541_v29  ;;  %v3543_v34 = vpop.xlane.xlu0 %682  ;;  %v1068_v29 = vrot.slane %v590_v58, %v3194_v6 }
 0x149   : > { %4214 = vst [vmem:[#allocation6_spill] sm:$0xff] %v3543_v34  ;;  %v1073_v34 = vrot.slane %v591_v2, %v3264_v30  ;;  %v1297_v2 = vrot.slane %v3399_v46, %v3176_v22  ;;  %v1332_v46 = vsel %vm892_vm1, %v1331_v60, %v3279_v53 }
 0x14a   : > { %v1069_v58 = vsel %vm906_vm3, %v1068_v29, %v1064_v36 }
 0x14b   : > { %v3545_v56 = vpop.xlane.xlu1 %745  ;;  %v1074_v27 = vsel %vm913_vm4, %v1073_v34, %v1069_v58  ;;  %v1351_v34 = vrot.slane %v662_v44, %v3414_v38  ;;  %v1298_v58 = vsel %vm899_vm2, %v1297_v2, %v1293_v55  ;;  %v599_v55 = vmul.f32 0.00390625, %v3533_v14 }
 0x14c   : > { %4215 = vst [vmem:[#allocation5_spill] sm:$0xff] %v3545_v56  ;;  %v3547_v8 = vpop.xlane.xlu0 %724  ;;  %v1078_v56 = vrot.slane %v592_v57, %v3414_v38  ;;  %v1341_v57 = vrot.slane %v3458_v49, %v3194_v6  ;;  %v1307_v49 = vrot.slane %v3511_v10, %v3264_v30  ;;  %v1303_v10 = vsel %vm906_vm3, %v1302_v54, %v1298_v58 }
 0x14d   : > { %4216 = vst [vmem:[#allocation8_spill] sm:$0xff] %v3547_v8 }
 0x14e   : > { %v1079_v29 = vsel %vm920_vm5, %v1078_v56, %v1074_v27  ;;  %v1308_v62 = vsel %vm913_vm4, %v1307_v49, %v1303_v10  ;;  %v597_v49 = vmul.f32 0.00390625, %v3450_v32  ;;  %v1112_v10 = vrot.slane %v599_v55, %v3264_v30 }
 0x14f   : > { %v3551_v12 = vpop.xlane.xlu1 %766 }
 0x150   : > { %v3553_v51 = vpop.xlane.xlu0 %763 }
 0x153   : > { %v501_v48 = vpop.xlane.xlu1 %500 }
 0x154   : > { %v480_v8 = vpop.xlane.xlu0 %479 }
 0x155   : > { %v593_v15 = vmul.f32 0.00390625, %v480_v8 }
 0x157   : > { %v1083_v20 = vrot.slane %v593_v15, %v3419_v24  ;;  %v3574_v61 = vpop.xlane.xlu1 %542  ;;  %v1337_v15 = vsel %vm899_vm2, %v1336_v50, %v1332_v46 }
 0x158   : > { %v3581_v8 = vpop.xlane.xlu0 %521  ;;  %v1342_v53 = vsel %vm906_vm3, %v1341_v57, %v1337_v15 }
 0x159   : > { %v1084_v36 = vsel %vm927_vm6, %v1083_v20, %v1079_v29  ;;  %v1347_v44 = vsel %vm913_vm4, %v1346_v45, %v1342_v53  ;;  %v596_v29 = vmul.f32 0.00390625, %v3377_v18  ;;  %v1102_v53 = vrot.slane %v597_v49, %v3176_v22 }
 0x15a   : > { %v1209_v56 = vsel %vm1208_vm10, %v1084_v36, %v1207_v0  ;;  %v1352_v25 = vsel %vm920_vm5, %v1351_v34, %v1347_v44  ;;  %v1313_v0 = vsel %vm920_vm5, %v1312_v3, %v1308_v62  ;;  %v598_v36 = vmul.f32 0.00390625, %v3500_v47 }
 0x15b   : > { %v665_v60 = vpop.xlane.xlu1 %664  ;;  %v1097_v15 = vrot.slane %v596_v29, %v3143_v17  ;;  %v600_v3 = vmul.f32 0.00390625, %v501_v48 }
 0x15c   : > { %v1356_v27 = vrot.slane %v665_v60, %v3419_v24  ;;  %v641_v20 = vpop.xlane.xlu0 %640  ;;  %v1107_v18 = vrot.slane %v598_v36, %v3194_v6 }
 0x15d   : > { %v1317_v52 = vrot.slane %v641_v20, %v3419_v24  ;;  %v1098_v32 = vsel %vm892_vm1, %v1097_v15, %v3341_v42  ;;  %v1117_v47 = vrot.slane %v600_v3, %v3414_v38  ;;  %v603_v3 = vmul.f32 0.00390625, %v3385_v16 }
 0x15e   : > { %v1357_v50 = vsel %vm927_vm6, %v1356_v27, %v1352_v25  ;;  %v1103_v14 = vsel %vm899_vm2, %v1102_v53, %v1098_v32  ;;  %v602_v53 = vmul.f32 0.00390625, %v3389_v59  ;;  %v604_v32 = vmul.f32 0.00390625, %v3446_v39 }
 0x15f   : > { %v1318_v2 = vsel %vm927_vm6, %v1317_v52, %v1313_v0  ;;  %v3605_v57 = vpop.xlane.xlu1 %706  ;;  %v1108_v20 = vsel %vm906_vm3, %v1107_v18, %v1103_v14  ;;  %v1370_v59 = vrot.slane %v3406_v43, %v3143_v17 }
 0x160   : > { %v3608_v54 = vsel %vm1202_vm7, %v1357_v50, %v1318_v2  ;;  %v3610_v45 = vpop.xlane.xlu0 %685  ;;  %v1113_v62 = vsel %vm913_vm4, %v1112_v10, %v1108_v20  ;;  %v1361_v10 = vrot.slane %v3349_v35, %v3118_v9  ;;  %v1127_v16 = vrot.slane %v602_v53, %v3118_v9 }
 0x161   : > { %v1118_v52 = vsel %vm920_vm5, %v1117_v47, %v1113_v62  ;;  %v611_v47 = vmul.f32 0.00390625, %v3452_v11  ;;  %v605_v35 = vmul.f32 0.00390625, %v3507_v5  ;;  %v1400_v11 = vrot.slane %v3401_v21, %v3118_v9 }
 0x162   : > { %v606_v62 = vmul.f32 0.00390625, %v3539_v7  ;;  %v613_v21 = vmul.f32 0.00390625, %v3537_v1 }
 0x163   : > { %v3613_v46 = vpop.xlane.xlu1 %748 }
 0x164   : > { %v3616_v34 = vpop.xlane.xlu0 %727 }
 0x167   : > { %v3621_v58 = vpop.xlane.xlu1 %787 }
 0x168   : > { %v3624_v60 = vpop.xlane.xlu0 %769 }
 0x16b   : > { %v504_v44 = vpop.xlane.xlu1 %503 }
 0x16c   : > { %v601_v27 = vmul.f32 0.00390625, %v504_v44  ;;  %v3632_v48 = vpop.xlane.xlu0 %790  ;;  %v610_v44 = vmul.f32 0.00390625, %v3456_v40  ;;  %v612_v40 = vmul.f32 0.00390625, %v3505_v31 }
 0x16e   : > { %v1122_v25 = vrot.slane %v601_v27, %v3419_v24  ;;  %v1131_v27 = vrot.slane %v603_v3, %v3121_v23  ;;  %v1166_v43 = vrot.slane %v610_v44, %v3118_v9 }
 0x16f   : > { %v546_v0 = vpop.xlane.xlu1 %545 }
 0x170   : > { %v1123_v42 = vsel %vm927_vm6, %v1122_v25, %v1118_v52  ;;  %v525_v50 = vpop.xlane.xlu0 %524  ;;  %v1136_v25 = vrot.slane %v604_v32, %v3143_v17  ;;  %v1170_v52 = vrot.slane %v611_v47, %v3121_v23  ;;  %v1132_v5 = vsel %vm885_vm0, %v1131_v27, %v1127_v16 }
 0x171   : > { %v3640_v2 = vsel %vm1210_vm11, %v1123_v42, %v1209_v56  ;;  %v1365_v56 = vrot.slane %v3345_v13, %v3121_v23  ;;  %v1404_v13 = vrot.slane %v3416_v26, %v3121_v23  ;;  %v607_v42 = vmul.f32 0.00390625, %v3581_v8 }
 0x172   : > { %v608_v53 = vmul.f32 0.00390625, %v525_v50  ;;  %v1175_v8 = vrot.slane %v612_v40, %v3143_v17  ;;  %v1146_v47 = vrot.slane %v606_v62, %v3194_v6  ;;  %v615_v44 = vmul.f32 0.00390625, %v546_v0 }
 0x173   : > { %v3642_v29 = vpop.xlane.xlu1 %709  ;;  %v1366_v39 = vsel %vm885_vm0, %v1365_v56, %v1361_v10  ;;  %v1405_v7 = vsel %vm885_vm0, %v1404_v13, %v1400_v11  ;;  %v1141_v56 = vrot.slane %v605_v35, %v3176_v22  ;;  %v614_v10 = vmul.f32 0.00390625, %v3574_v61 }
 0x174   : > { %v3644_v49 = vpop.xlane.xlu0 %688  ;;  %v1371_v3 = vsel %vm892_vm1, %v1370_v59, %v1366_v39  ;;  %v1137_v27 = vsel %vm892_vm1, %v1136_v25, %v1132_v5  ;;  %v1171_v1 = vsel %vm885_vm0, %v1170_v52, %v1166_v43  ;;  %v1151_v50 = vrot.slane %v607_v42, %v3264_v30 }
 0x175   : > { %v1409_v13 = vrot.slane %v3468_v33, %v3143_v17  ;;  %v1375_v61 = vrot.slane %v3476_v41, %v3176_v22  ;;  %v1156_v0 = vrot.slane %v608_v53, %v3414_v38  ;;  %v1443_v39 = vrot.slane %v3479_v28, %v3121_v23 }
 0x176   : > { %v1142_v11 = vsel %vm899_vm2, %v1141_v56, %v1137_v27  ;;  %v1439_v33 = vrot.slane %v3487_v63, %v3118_v9  ;;  %v1176_v41 = vsel %vm892_vm1, %v1175_v8, %v1171_v1  ;;  %v1190_v25 = vrot.slane %v615_v44, %v3264_v30 }
 0x177   : > { %v3646_v36 = vpop.xlane.xlu1 %751  ;;  %v1147_v62 = vsel %vm906_vm3, %v1146_v47, %v1142_v11  ;;  %v1414_v52 = vrot.slane %v3513_v4, %v3176_v22  ;;  %v1380_v28 = vrot.slane %v3515_v19, %v3194_v6  ;;  %v1376_v19 = vsel %vm899_vm2, %v1375_v61, %v1371_v3  ;;  %v4218_v61 = vld [vmem:[#allocation6_spill] sm:$0xff] }
 0x178   : > { %v3648_v55 = vpop.xlane.xlu0 %730  ;;  %v1152_v43 = vsel %vm913_vm4, %v1151_v50, %v1147_v62  ;;  %v1448_v8 = vrot.slane %v3521_v37, %v3143_v17  ;;  %v1444_v27 = vsel %vm885_vm0, %v1443_v39, %v1439_v33  ;;  %v1385_v37 = vrot.slane %v4218_v61, %v3264_v30  ;;  %v4219_v11 = vld [vmem:[#allocation2_spill] sm:$0xff] }
 0x179   : > { %v1157_v63 = vsel %vm920_vm5, %v1156_v0, %v1152_v43  ;;  %v4222_v43 = vld [vmem:[#allocation8_spill] sm:$0xff] }
 0x17b   : > { %v3650_v15 = vpop.xlane.xlu1 %793 }
 0x17c   : > { %v3654_v18 = vpop.xlane.xlu0 %772 }
 0x17f   : > { %v549_v14 = vpop.xlane.xlu1 %548 }
 0x180   : > { %v528_v20 = vpop.xlane.xlu0 %527  ;;  %v616_v16 = vmul.f32 0.00390625, %v549_v14  ;;  %v1185_v14 = vrot.slane %v614_v10, %v3194_v6  ;;  %v1410_v10 = vsel %vm892_vm1, %v1409_v13, %v1405_v7  ;;  %v1381_v7 = vsel %vm906_vm3, %v1380_v28, %v1376_v19  ;;  %v4217_v13 = vld [vmem:[#allocation3_spill] sm:$0xff] }
 0x181   : > { %v609_v32 = vmul.f32 0.00390625, %v528_v20  ;;  %v1180_v20 = vrot.slane %v613_v21, %v3176_v22  ;;  %v1415_v1 = vsel %vm899_vm2, %v1414_v52, %v1410_v10  ;;  %v1478_v3 = vrot.slane %v4217_v13, %v3118_v9  ;;  %v4221_v52 = vld [vmem:[#allocation5_spill] sm:$0xff] }
 0x182   : > { %v1195_v42 = vrot.slane %v616_v16, %v3414_v38  ;;  %v1487_v28 = vrot.slane %v4221_v52, %v3143_v17  ;;  %v1386_v10 = vsel %vm913_vm4, %v1385_v37, %v1381_v7  ;;  %v1429_v19 = vrot.slane %v3642_v29, %v3414_v38 }
 0x183   : > { %v3679_v26 = vpop.xlane.xlu1 %733  ;;  %v1161_v40 = vrot.slane %v609_v32, %v3419_v24  ;;  %v1181_v21 = vsel %vm899_vm2, %v1180_v20, %v1176_v41  ;;  %v1390_v41 = vrot.slane %v3610_v45, %v3414_v38  ;;  %v1517_v45 = vrot.slane %v3553_v51, %v3118_v9 }
 0x184   : > { %v3684_v31 = vpop.xlane.xlu0 %712  ;;  %v1186_v4 = vsel %vm906_vm3, %v1185_v14, %v1181_v21  ;;  %v1482_v14 = vrot.slane %v4219_v11, %v3121_v23  ;;  %v1424_v21 = vrot.slane %v3605_v57, %v3264_v30  ;;  %v1468_v61 = vrot.slane %v3679_v26, %v3414_v38 }
 0x185   : > { %v1162_v32 = vsel %vm927_vm6, %v1161_v40, %v1157_v63  ;;  %v1191_v47 = vsel %vm913_vm4, %v1190_v25, %v1186_v4  ;;  %v4220_v40 = vld [vmem:[#allocation4_spill] sm:$0xff]  ;;  %v1449_v25 = vsel %vm892_vm1, %v1448_v8, %v1444_v27  ;;  %v1492_v63 = vrot.slane %v3613_v46, %v3176_v22 }
 0x186   : > { %v1196_v16 = vsel %vm920_vm5, %v1195_v42, %v1191_v47  ;;  %v1213_v39 = vsel %vm1212_vm12, %v1162_v32, %v3640_v2  ;;  %v1419_v33 = vrot.slane %v4220_v40, %v3194_v6  ;;  %v1453_v42 = vrot.slane %v4222_v43, %v3176_v22 }
 0x187   : > { %v3694_v59 = vpop.xlane.xlu1 %775  ;;  %v1395_v2 = vrot.slane %v3644_v49, %v3419_v24  ;;  %v1458_v49 = vrot.slane %v3616_v34, %v3194_v6  ;;  %v1526_v4 = vrot.slane %v3624_v60, %v3143_v17  ;;  %v1483_v32 = vsel %vm885_vm0, %v1482_v14, %v1478_v3 }
 0x188   : > { %v3702_v35 = vpop.xlane.xlu0 %754  ;;  %v1420_v57 = vsel %vm906_vm3, %v1419_v33, %v1415_v1  ;;  %v1391_v46 = vsel %vm920_vm5, %v1390_v41, %v1386_v10  ;;  %v1488_v8 = vsel %vm892_vm1, %v1487_v28, %v1483_v32  ;;  %v1556_v34 = vrot.slane %v3621_v58, %v3118_v9 }
 0x189   : > { %v1396_v60 = vsel %vm927_vm6, %v1395_v2, %v1391_v46  ;;  %v1493_v27 = vsel %vm899_vm2, %v1492_v63, %v1488_v8  ;;  %v1463_v58 = vrot.slane %v3648_v55, %v3264_v30  ;;  %v1531_v3 = vrot.slane %v3654_v18, %v3176_v22  ;;  %v2402_v46 = vld [vmem:[%s4159_s2] ss:$0 sm:$0xff] }
 0x18a   : > { %v1593_v13 = vsel %vm1204_vm8, %v1396_v60, %v3608_v54  ;;  %v1536_v55 = vrot.slane %v3694_v59, %v3194_v6  ;;  %v1565_v54 = vrot.slane %v3650_v15, %v3143_v17 }
 0x18b   : > { %v552_v5 = vpop.xlane.xlu1 %551 }
 0x18c   : > { %v617_v53 = vmul.f32 0.00390625, %v552_v5  ;;  %v3722_v56 = vpop.xlane.xlu0 %796  ;;  %v1521_v5 = vrot.slane %v3551_v12, %v3121_v23  ;;  %v1560_v12 = vrot.slane %v3632_v48, %v3121_v23  ;;  %v1497_v23 = vrot.slane %v3646_v36, %v3194_v6 }
 0x18d   : > { %v1454_v48 = vsel %vm899_vm2, %v1453_v42, %v1449_v25  ;;  %v1570_v59 = vrot.slane %v3722_v56, %v3176_v22 }
 0x18e   : > { %v1200_v44 = vrot.slane %v617_v53, %v3419_v24  ;;  %v1522_v47 = vsel %vm885_vm0, %v1521_v5, %v1517_v45  ;;  %v1459_v29 = vsel %vm906_vm3, %v1458_v49, %v1454_v48  ;;  %v1561_v9 = vsel %vm885_vm0, %v1560_v12, %v1556_v34 }
 0x18f   : > { %v3735_v50 = vpop.xlane.xlu1 %757  ;;  %v1527_v7 = vsel %vm892_vm1, %v1526_v4, %v1522_v47  ;;  %v1498_v37 = vsel %vm906_vm3, %v1497_v23, %v1493_v27  ;;  %v1566_v25 = vsel %vm892_vm1, %v1565_v54, %v1561_v9  ;;  %vm1704_vm0 = vcmask 31744   ;;  %v2405_v47 = vld [vmem:[%s4161_s4] ss:$0 sm:$0xff] }
 0x190   : > { %v3742_v20 = vpop.xlane.xlu0 %736  ;;  %v1201_v0 = vsel %vm927_vm6, %v1200_v44, %v1196_v16  ;;  %v1425_v44 = vsel %vm913_vm4, %v1424_v21, %v1420_v57  ;;  %v1507_v18 = vrot.slane %v3735_v50, %v3414_v38  ;;  %v1532_v17 = vsel %vm899_vm2, %v1531_v3, %v1527_v7 }
 0x191   : > { %v1215_v62 = vsel %vm1214_vm13, %v1201_v0, %v1213_v39  ;;  %v1430_v36 = vsel %vm920_vm5, %v1429_v19, %v1425_v44  ;;  %v1434_v0 = vrot.slane %v3684_v31, %v3419_v24  ;;  %v1502_v39 = vrot.slane %v3702_v35, %v3264_v30 }
 0x192   : > { %2443 = vmatprep.mubr.msk.f32.mxu0 %vm1614_vm14, %v1215_v62  ;;  %v1473_v26 = vrot.slane %v3742_v20, %v3419_v24  ;;  %v1464_v31 = vsel %vm913_vm4, %v1463_v58, %v1459_v29  ;;  %v1537_v62 = vsel %vm906_vm3, %v1536_v55, %v1532_v17 }
 0x193   : > { %v3770_v53 = vpop.xlane.xlu1 %799  ;;  %v1469_v15 = vsel %vm920_vm5, %v1468_v61, %v1464_v31  ;;  %v1435_v41 = vsel %vm927_vm6, %v1434_v0, %v1430_v36  ;;  %v1503_v22 = vsel %vm913_vm4, %v1502_v39, %v1498_v37  ;;  %v4223_v36 = vld [vmem:[#allocation9_spill] sm:$0xff] }
 0x194   : > { %v779_v51 = vpop.xlane.xlu0 %778  ;;  %v1575_v50 = vrot.slane %v3770_v53, %v3194_v6  ;;  %v1508_v52 = vsel %vm920_vm5, %v1507_v18, %v1503_v22  ;;  %v1474_v28 = vsel %vm927_vm6, %v1473_v26, %v1469_v15  ;;  %v1571_v6 = vsel %vm899_vm2, %v1570_v59, %v1566_v25  ;;  %v2481_v22 = vld [vmem:[%s2661_s24] sm:$0xff]  ;;  %v2482_v25 = vld [vmem:[%s2661_s24 + $0x8] sm:$0xff] }
 0x195   : > { %v1541_v11 = vrot.slane %v779_v51, %v3264_v30  ;;  %v1834_v37 = vsub.s32 1, %v4223_v36  ;;  %v1869_v55 = vsub.s32 2, %v4223_v36  ;;  %v1904_v54 = vsub.s32 3, %v4223_v36 }
 0x196   : > { %v1576_v63 = vsel %vm906_vm3, %v1575_v50, %v1571_v6  ;;  %v1939_v26 = vsub.s32 4, %v4223_v36  ;;  %v2009_v59 = vsub.s32 6, %v4223_v36  ;;  %v2479_v50 = vld [vmem:[%s2661_s24 + $0x10] sm:$0xff] }
 0x197   : > { %v782_v1 = vpop.xlane.xlu1 %781  ;;  %v1542_v43 = vsel %vm913_vm4, %v1541_v11, %v1537_v62 }
 0x198   : > { %v761_v16 = vpop.xlane.xlu0 %760  ;;  %v1546_v40 = vrot.slane %v782_v1, %v3414_v38 }
 0x199   : > { %v1512_v35 = vrot.slane %v761_v16, %v3419_v24 }
 0x19a   : > { %v1547_v2 = vsel %vm920_vm5, %v1546_v40, %v1542_v43 }
 0x19b   : > { %v785_v14 = vpop.xlane.xlu1 %784  ;;  %v1513_v5 = vsel %vm927_vm6, %v1512_v35, %v1508_v52  ;;  %v2044_v35 = vsub.s32 7, %v4223_v36 }
 0x19c   : > { %v803_v33 = vpop.xlane.xlu0 %802  ;;  %v1551_v20 = vrot.slane %v785_v14, %v3419_v24  ;;  %v1974_v14 = vsub.s32 5, %v4223_v36 }
 0x19d   : > { %v1580_v56 = vrot.slane %v803_v33, %v3264_v30  ;;  %v1594_v30 = vsel %vm1206_vm9, %v1435_v41, %v1593_v13  ;;  %v1799_v13 = vsub.s32 0, %v4223_v36  ;;  %v2480_v41 = vld [vmem:[%s2661_s24 + $0x18] sm:$0xff]  ;;  %v2497_v36 = vld [vmem:[%s2661_s24 + $0xa0] sm:$0xff] }
 0x19e   : > { %v1552_v53 = vsel %vm927_vm6, %v1551_v20, %v1547_v2  ;;  %v1595_v49 = vsel %vm1208_vm10, %v1474_v28, %v1594_v30  ;;  %v2484_v2 = vld [vmem:[%s2661_s24 + $0x28] sm:$0xff] }
 0x19f   : > { %v809_v42 = vpop.xlane.xlu1 %808  ;;  %v1581_v4 = vsel %vm913_vm4, %v1580_v56, %v1576_v63  ;;  %v1596_v12 = vsel %vm1210_vm11, %v1513_v5, %v1595_v49  ;;  %v2486_v30 = vld [vmem:[%s2661_s24 + $0x48] sm:$0xff]  ;;  %v2487_v49 = vld [vmem:[%s2661_s24 + $0x30] sm:$0xff] }
 0x1a0   : > { %v806_v45 = vpop.xlane.xlu0 %805  ;;  %v1590_v21 = vrot.slane %v809_v42, %v3419_v24  ;;  %v1597_v24 = vsel %vm1212_vm12, %v1552_v53, %v1596_v12  ;;  %v2483_v42 = vld [vmem:[%s2661_s24 + $0x20] sm:$0xff]  ;;  %v2488_v12 = vld [vmem:[%s2661_s24 + $0x38] sm:$0xff] }
 0x1a1   : > { %v1585_v10 = vrot.slane %v806_v45, %v3414_v38  ;;  %v1696_v38 = vld [vmem:[%s4160_s3] sm:$0xf] }
 0x1a2   : > { %2446 = vmatprep.subr.msk.mxu1 %vm1711_vm15, %v1696_v38  ;;  %v2485_v45 = vld [vmem:[%s2661_s24 + $0x40] sm:$0xff] }
 0x1a3   : > { %v1586_v51 = vsel %vm920_vm5, %v1585_v10, %v1581_v4  ;;  %2447 = vmatpush3.msk.msra.mxu1 %vm1711_vm15, %v1696_v38 }
 0x1a4   : > { %v1591_v32 = vsel %vm927_vm6, %v1590_v21, %v1586_v51 }
 0x1a5   : > { %v1598_v57 = vsel %vm1214_vm13, %v1591_v32, %v1597_v24  ;;  %v2489_v32 = vld [vmem:[%s2661_s24 + $0x60] sm:$0xff] }
 0x1a6   : > { %2444 = vmatmul.mubr.msk.f32.vlgmr.msra.gmra.mrb[0].mxu0 %vm1614_vm14, %v1598_v57  ;;  %v2490_v57 = vld [vmem:[%s2661_s24 + $0x68] sm:$0xff] }
 0x279   : > { %v2445_v19 = vpop.f32.mrb[0].mxu0 }
 0x27a   : > { %v1691_v8 = vadd.f32 %v2445_v19, %v2402_v46  ;;  %v1685_v34 = vpop.f32.mrb[1].mxu0 }
 0x27b   : > { %v1686_v60 = vadd.f32 %v2402_v46, %v1685_v34 }
 0x27c   : > { %v1695_v48 = vmax.f32 %v1691_v8, 0.0  ;;  %v2491_v8 = vld [vmem:[%s2661_s24 + $0x50] sm:$0xff] }
 0x27d   : > { %v1694_v23 = vmax.f32 %v1686_v60, 0.0  ;;  %v2492_v60 = vld [vmem:[%s2661_s24 + $0x58] sm:$0xff] }
 0x27f   : > { %2448 = vmatprep.mubr.msk.f32.mxu1 %vm1704_vm0, %v1694_v23 }
 0x280   : > { %2449 = vmatmul.mubr.msk.f32.vlgmr.msra.gmra.mrb[0].mxu1 %vm1704_vm0, %v1695_v48  ;;  %v2493_v48 = vld [vmem:[%s2661_s24 + $0x80] sm:$0xff] }
 0x353   : > { %v2450_v44 = vpop.f32.mrb[0].mxu1 }
 0x354   : > { %v1787_v27 = vadd.f32 %v2450_v44, %v2405_v47  ;;  %v1781_v1 = vpop.f32.mrb[1].mxu1  ;;  %v2494_v44 = vld [vmem:[%s2661_s24 + $0x88] sm:$0xff] }
 0x355   : > { %v1782_v29 = vadd.f32 %v2405_v47, %v1781_v1 }
 0x357   : > { %v1790_v7 = vadd.f32 %v1787_v27, %v1782_v29 }
 0x359   : > { %v2409_v9 = vmul.f32 -1.442695, %v1790_v7  ;;  %v2495_v7 = vld [vmem:[%s2661_s24 + $0x70] sm:$0xff] }
 0x35b   : > { %2475 = vpow2.f32 %v2409_v9 }
 0x365   : > { %v2476_v58 = vpop.eup %2475 }
 0x366   : > { %v1794_v16 = vadd.f32 1.0, %v2476_v58  ;;  %v2496_v58 = vld [vmem:[%s2661_s24 + $0x78] sm:$0xff] }
 0x368   : > { %2477 = vrcp.f32 %v1794_v16 }
 0x372   : > { %v3864_v3 = vpop.eup %2477 }
 0x373   : > { %v1800_v61 = vrot.slane %v3864_v3, %v1799_v13  ;;  %v1835_v0 = vrot.slane %v3864_v3, %v1834_v37  ;;  %v1870_v39 = vrot.slane %v3864_v3, %v1869_v55  ;;  %v1905_v18 = vrot.slane %v3864_v3, %v1904_v54  ;;  %v2499_v55 = vld [vmem:[%s2661_s24 + $0x90] sm:$0xff]  ;;  %v2500_v54 = vld [vmem:[%s2661_s24 + $0x98] sm:$0xff] }
 0x374   : > { %v1940_v11 = vrot.slane %v3864_v3, %v1939_v26  ;;  %v1975_v31 = vrot.slane %v3864_v3, %v1974_v14  ;;  %v2010_v40 = vrot.slane %v3864_v3, %v2009_v59  ;;  %v3881_v33 = vrot.slane %v3864_v3, %v2044_v35  ;;  %v2498_v3 = vld [vmem:[%s2661_s24 + $0xa8] sm:$0xff]  ;;  %v2501_v26 = vld [vmem:[%s2661_s24 + $0xc0] sm:$0xff]  ;;  %v2503_v35 = vld [vmem:[%s2661_s24 + $0xb0] sm:$0xff] }
 0x375   : > { %1806 = vbcast.lane.b32.xlu1 %v1800_v61, 264  ;;  %1802 = vbcast.lane.b32.xlu0 %v1800_v61, 256  ;;  %v2502_v14 = vld [vmem:[%s2661_s24 + $0xc8] sm:$0xff] }
 0x379   : > { %1810 = vbcast.lane.b32.xlu1 %v1800_v61, 272  ;;  %1818 = vbcast.lane.b32.xlu0 %v1800_v61, 288 }
 0x37d   : > { %1814 = vbcast.lane.b32.xlu1 %v1800_v61, 280  ;;  %1826 = vbcast.lane.b32.xlu0 %v1800_v61, 304 }
 0x381   : > { %1822 = vbcast.lane.b32.xlu1 %v1800_v61, 296  ;;  %1837 = vbcast.lane.b32.xlu0 %v1835_v0, 256 }
 0x385   : > { %1830 = vbcast.lane.b32.xlu1 %v1800_v61, 312  ;;  %1845 = vbcast.lane.b32.xlu0 %v1835_v0, 272 }
 0x389   : > { %1841 = vbcast.lane.b32.xlu1 %v1835_v0, 264  ;;  %1853 = vbcast.lane.b32.xlu0 %v1835_v0, 288 }
 0x38d   : > { %1849 = vbcast.lane.b32.xlu1 %v1835_v0, 280  ;;  %1861 = vbcast.lane.b32.xlu0 %v1835_v0, 304 }
 0x391   : > { %1857 = vbcast.lane.b32.xlu1 %v1835_v0, 296  ;;  %1872 = vbcast.lane.b32.xlu0 %v1870_v39, 256 }
 0x395   : > { %1865 = vbcast.lane.b32.xlu1 %v1835_v0, 312  ;;  %1880 = vbcast.lane.b32.xlu0 %v1870_v39, 272 }
 0x399   : > { %1876 = vbcast.lane.b32.xlu1 %v1870_v39, 264  ;;  %1888 = vbcast.lane.b32.xlu0 %v1870_v39, 288 }
 0x39d   : > { %1884 = vbcast.lane.b32.xlu1 %v1870_v39, 280  ;;  %1896 = vbcast.lane.b32.xlu0 %v1870_v39, 304 }
 0x3a1   : > { %1892 = vbcast.lane.b32.xlu1 %v1870_v39, 296  ;;  %1907 = vbcast.lane.b32.xlu0 %v1905_v18, 256 }
 0x3a5   : > { %1900 = vbcast.lane.b32.xlu1 %v1870_v39, 312  ;;  %1915 = vbcast.lane.b32.xlu0 %v1905_v18, 272 }
 0x3a9   : > { %1911 = vbcast.lane.b32.xlu1 %v1905_v18, 264  ;;  %1923 = vbcast.lane.b32.xlu0 %v1905_v18, 288 }
 0x3ad   : > { %1919 = vbcast.lane.b32.xlu1 %v1905_v18, 280  ;;  %1931 = vbcast.lane.b32.xlu0 %v1905_v18, 304 }
 0x3b1   : > { %1927 = vbcast.lane.b32.xlu1 %v1905_v18, 296  ;;  %1942 = vbcast.lane.b32.xlu0 %v1940_v11, 256 }
 0x3b5   : > { %1935 = vbcast.lane.b32.xlu1 %v1905_v18, 312  ;;  %1950 = vbcast.lane.b32.xlu0 %v1940_v11, 272 }
 0x3b9   : > { %1946 = vbcast.lane.b32.xlu1 %v1940_v11, 264  ;;  %1958 = vbcast.lane.b32.xlu0 %v1940_v11, 288 }
 0x3bd   : > { %1954 = vbcast.lane.b32.xlu1 %v1940_v11, 280  ;;  %1966 = vbcast.lane.b32.xlu0 %v1940_v11, 304 }
 0x3c1   : > { %1962 = vbcast.lane.b32.xlu1 %v1940_v11, 296  ;;  %1977 = vbcast.lane.b32.xlu0 %v1975_v31, 256 }
 0x3c5   : > { %1970 = vbcast.lane.b32.xlu1 %v1940_v11, 312  ;;  %1985 = vbcast.lane.b32.xlu0 %v1975_v31, 272 }
 0x3c9   : > { %1981 = vbcast.lane.b32.xlu1 %v1975_v31, 264  ;;  %1993 = vbcast.lane.b32.xlu0 %v1975_v31, 288 }
 0x3cd   : > { %1989 = vbcast.lane.b32.xlu1 %v1975_v31, 280  ;;  %2001 = vbcast.lane.b32.xlu0 %v1975_v31, 304 }
 0x3d1   : > { %1997 = vbcast.lane.b32.xlu1 %v1975_v31, 296  ;;  %2012 = vbcast.lane.b32.xlu0 %v2010_v40, 256 }
 0x3d5   : > { %2005 = vbcast.lane.b32.xlu1 %v1975_v31, 312  ;;  %2020 = vbcast.lane.b32.xlu0 %v2010_v40, 272 }
 0x3d9   : > { %2016 = vbcast.lane.b32.xlu1 %v2010_v40, 264  ;;  %2028 = vbcast.lane.b32.xlu0 %v2010_v40, 288 }
 0x3dd   : > { %2024 = vbcast.lane.b32.xlu1 %v2010_v40, 280  ;;  %2036 = vbcast.lane.b32.xlu0 %v2010_v40, 304 }
 0x3e1   : > { %2032 = vbcast.lane.b32.xlu1 %v2010_v40, 296  ;;  %2047 = vbcast.lane.b32.xlu0 %v3881_v33, 256 }
 0x3e5   : > { %2040 = vbcast.lane.b32.xlu1 %v2010_v40, 312  ;;  %2055 = vbcast.lane.b32.xlu0 %v3881_v33, 272 }
 0x3e7   : > { %v1807_v17 = vpop.permute.xlu1 %1806  ;;  %v1803_v15 = vpop.permute.xlu0 %1802 }
 0x3e8   : > { %v2079_v20 = vmul.f32 %v2479_v50, %v1807_v17  ;;  %v2080_v62 = vmul.f32 %v2480_v41, %v1807_v17  ;;  %v2077_v56 = vmul.f32 %v2481_v22, %v1803_v15  ;;  %v2078_v52 = vmul.f32 %v2482_v25, %v1803_v15  ;;  %v2504_v17 = vld [vmem:[%s2661_s24 + $0xb8] sm:$0xff]  ;;  %v2505_v50 = vld [vmem:[%s2661_s24 + $0xe0] sm:$0xff]  ;;  %v2506_v41 = vld [vmem:[%s2661_s24 + $0xe8] sm:$0xff] }
 0x3e9   : > { %2051 = vbcast.lane.b32.xlu1 %v3881_v33, 264  ;;  %2063 = vbcast.lane.b32.xlu0 %v3881_v33, 288  ;;  %v2507_v25 = vld [vmem:[%s2661_s24 + $0xd0] sm:$0xff] }
 0x3ea   : > { %2207 = vst [vmem:[%s3890_s28 + $0x10] sm:$0xff] %v2079_v20  ;;  %2208 = vst [vmem:[%s3890_s28 + $0x18] sm:$0xff] %v2080_v62 }
 0x3eb   : > { %2205 = vst [vmem:[%s3890_s28] sm:$0xff] %v2077_v56  ;;  %2206 = vst [vmem:[%s3890_s28 + $0x8] sm:$0xff] %v2078_v52  ;;  %v1811_v28 = vpop.permute.xlu1 %1810  ;;  %v1819_v43 = vpop.permute.xlu0 %1818 }
 0x3ec   : > { %v2081_v6 = vmul.f32 %v2483_v42, %v1811_v28  ;;  %v2082_v5 = vmul.f32 %v2484_v2, %v1811_v28  ;;  %v2085_v21 = vmul.f32 %v2485_v45, %v1819_v43  ;;  %v2086_v63 = vmul.f32 %v2486_v30, %v1819_v43  ;;  %v2508_v28 = vld [vmem:[%s2661_s24 + $0xd8] sm:$0xff]  ;;  %v2509_v42 = vld [vmem:[%s2661_s24 + $0x100] sm:$0xff]  ;;  %v2510_v2 = vld [vmem:[%s2661_s24 + $0x108] sm:$0xff] }
 0x3ed   : > { %2059 = vbcast.lane.b32.xlu1 %v3881_v33, 280  ;;  %2071 = vbcast.lane.b32.xlu0 %v3881_v33, 304  ;;  %v2511_v30 = vld [vmem:[%s2661_s24 + $0xf0] sm:$0xff] }
 0x3ee   : > { %2209 = vst [vmem:[%s3890_s28 + $0x20] sm:$0xff] %v2081_v6  ;;  %2210 = vst [vmem:[%s3890_s28 + $0x28] sm:$0xff] %v2082_v5 }
 0x3ef   : > { %2213 = vst [vmem:[%s3890_s28 + $0x40] sm:$0xff] %v2085_v21  ;;  %2214 = vst [vmem:[%s3890_s28 + $0x48] sm:$0xff] %v2086_v63  ;;  %v1815_v53 = vpop.permute.xlu1 %1814  ;;  %v1827_v10 = vpop.permute.xlu0 %1826 }
 0x3f0   : > { %v2083_v4 = vmul.f32 %v2487_v49, %v1815_v53  ;;  %v2084_v51 = vmul.f32 %v2488_v12, %v1815_v53  ;;  %v2089_v24 = vmul.f32 %v2489_v32, %v1827_v10  ;;  %v2090_v38 = vmul.f32 %v2490_v57, %v1827_v10  ;;  %v2512_v53 = vld [vmem:[%s2661_s24 + $0xf8] sm:$0xff]  ;;  %v2513_v49 = vld [vmem:[%s2661_s24 + $0x120] sm:$0xff]  ;;  %v2514_v12 = vld [vmem:[%s2661_s24 + $0x128] sm:$0xff] }
 0x3f1   : > { %2067 = vbcast.lane.b32.xlu1 %v3881_v33, 296  ;;  %v2515_v57 = vld [vmem:[%s2661_s24 + $0x110] sm:$0xff] }
 0x3f2   : > { %2211 = vst [vmem:[%s3890_s28 + $0x30] sm:$0xff] %v2083_v4  ;;  %2212 = vst [vmem:[%s3890_s28 + $0x38] sm:$0xff] %v2084_v51 }
 0x3f3   : > { %2217 = vst [vmem:[%s3890_s28 + $0x60] sm:$0xff] %v2089_v24  ;;  %2218 = vst [vmem:[%s3890_s28 + $0x68] sm:$0xff] %v2090_v38  ;;  %v1823_v46 = vpop.permute.xlu1 %1822  ;;  %v1838_v19 = vpop.permute.xlu0 %1837 }
 0x3f4   : > { %v2087_v34 = vmul.f32 %v2491_v8, %v1823_v46  ;;  %v2088_v23 = vmul.f32 %v2492_v60, %v1823_v46  ;;  %v2093_v47 = vmul.f32 %v2493_v48, %v1838_v19  ;;  %v2094_v27 = vmul.f32 %v2494_v44, %v1838_v19  ;;  %v2516_v46 = vld [vmem:[%s2661_s24 + $0x118] sm:$0xff]  ;;  %v2517_v8 = vld [vmem:[%s2661_s24 + $0x140] sm:$0xff]  ;;  %v2518_v60 = vld [vmem:[%s2661_s24 + $0x148] sm:$0xff] }
 0x3f5   : > { %2075 = vbcast.lane.b32.xlu1 %v3881_v33, 312  ;;  %v2519_v44 = vld [vmem:[%s2661_s24 + $0x130] sm:$0xff] }
 0x3f6   : > { %2215 = vst [vmem:[%s3890_s28 + $0x50] sm:$0xff] %v2087_v34  ;;  %2216 = vst [vmem:[%s3890_s28 + $0x58] sm:$0xff] %v2088_v23 }
 0x3f7   : > { %2221 = vst [vmem:[%s3890_s28 + $0x80] sm:$0xff] %v2093_v47  ;;  %2222 = vst [vmem:[%s3890_s28 + $0x88] sm:$0xff] %v2094_v27  ;;  %v1831_v1 = vpop.permute.xlu1 %1830  ;;  %v1846_v29 = vpop.permute.xlu0 %1845 }
 0x3f8   : > { %v2091_v9 = vmul.f32 %v2495_v7, %v1831_v1  ;;  %v2092_v16 = vmul.f32 %v2496_v58, %v1831_v1  ;;  %v2097_v13 = vmul.f32 %v2497_v36, %v1846_v29  ;;  %v2098_v61 = vmul.f32 %v2498_v3, %v1846_v29  ;;  %v2520_v1 = vld [vmem:[%s2661_s24 + $0x138] sm:$0xff]  ;;  %v2521_v7 = vld [vmem:[%s2661_s24 + $0x160] sm:$0xff]  ;;  %v2522_v58 = vld [vmem:[%s2661_s24 + $0x168] sm:$0xff] }
 0x3f9   : > { %v2523_v3 = vld [vmem:[%s2661_s24 + $0x150] sm:$0xff] }
 0x3fa   : > { %2219 = vst [vmem:[%s3890_s28 + $0x70] sm:$0xff] %v2091_v9  ;;  %2220 = vst [vmem:[%s3890_s28 + $0x78] sm:$0xff] %v2092_v16 }
 0x3fb   : > { %2225 = vst [vmem:[%s3890_s28 + $0xa0] sm:$0xff] %v2097_v13  ;;  %2226 = vst [vmem:[%s3890_s28 + $0xa8] sm:$0xff] %v2098_v61  ;;  %v1842_v37 = vpop.permute.xlu1 %1841  ;;  %v1854_v0 = vpop.permute.xlu0 %1853 }
 0x3fc   : > { %v2095_v39 = vmul.f32 %v2499_v55, %v1842_v37  ;;  %v2096_v18 = vmul.f32 %v2500_v54, %v1842_v37  ;;  %v2101_v11 = vmul.f32 %v2501_v26, %v1854_v0  ;;  %v2102_v31 = vmul.f32 %v2502_v14, %v1854_v0  ;;  %v2524_v37 = vld [vmem:[%s2661_s24 + $0x158] sm:$0xff]  ;;  %v2525_v55 = vld [vmem:[%s2661_s24 + $0x180] sm:$0xff]  ;;  %v2526_v54 = vld [vmem:[%s2661_s24 + $0x188] sm:$0xff] }
 0x3fd   : > { %v2527_v14 = vld [vmem:[%s2661_s24 + $0x170] sm:$0xff] }
 0x3fe   : > { %2223 = vst [vmem:[%s3890_s28 + $0x90] sm:$0xff] %v2095_v39  ;;  %2224 = vst [vmem:[%s3890_s28 + $0x98] sm:$0xff] %v2096_v18 }
 0x3ff   : > { %2229 = vst [vmem:[%s3890_s28 + $0xc0] sm:$0xff] %v2101_v11  ;;  %2230 = vst [vmem:[%s3890_s28 + $0xc8] sm:$0xff] %v2102_v31  ;;  %v1850_v59 = vpop.permute.xlu1 %1849  ;;  %v1862_v40 = vpop.permute.xlu0 %1861 }
 0x400   : > { %v2099_v33 = vmul.f32 %v2503_v35, %v1850_v59  ;;  %v2100_v15 = vmul.f32 %v2504_v17, %v1850_v59  ;;  %v2105_v20 = vmul.f32 %v2505_v50, %v1862_v40  ;;  %v2106_v62 = vmul.f32 %v2506_v41, %v1862_v40  ;;  %v2528_v59 = vld [vmem:[%s2661_s24 + $0x178] sm:$0xff]  ;;  %v2529_v35 = vld [vmem:[%s2661_s24 + $0x1a0] sm:$0xff]  ;;  %v2530_v17 = vld [vmem:[%s2661_s24 + $0x1a8] sm:$0xff] }
 0x401   : > { %v2531_v41 = vld [vmem:[%s2661_s24 + $0x190] sm:$0xff] }
 0x402   : > { %2227 = vst [vmem:[%s3890_s28 + $0xb0] sm:$0xff] %v2099_v33  ;;  %2228 = vst [vmem:[%s3890_s28 + $0xb8] sm:$0xff] %v2100_v15 }
 0x403   : > { %2233 = vst [vmem:[%s3890_s28 + $0xe0] sm:$0xff] %v2105_v20  ;;  %2234 = vst [vmem:[%s3890_s28 + $0xe8] sm:$0xff] %v2106_v62  ;;  %v1858_v22 = vpop.permute.xlu1 %1857  ;;  %v1873_v56 = vpop.permute.xlu0 %1872 }
 0x404   : > { %v2103_v52 = vmul.f32 %v2507_v25, %v1858_v22  ;;  %v2104_v43 = vmul.f32 %v2508_v28, %v1858_v22  ;;  %v2109_v6 = vmul.f32 %v2509_v42, %v1873_v56  ;;  %v2110_v5 = vmul.f32 %v2510_v2, %v1873_v56  ;;  %v2532_v22 = vld [vmem:[%s2661_s24 + $0x198] sm:$0xff]  ;;  %v2533_v25 = vld [vmem:[%s2661_s24 + $0x1c0] sm:$0xff]  ;;  %v2534_v28 = vld [vmem:[%s2661_s24 + $0x1c8] sm:$0xff] }
 0x405   : > { %v2535_v2 = vld [vmem:[%s2661_s24 + $0x1b0] sm:$0xff] }
 0x406   : > { %2231 = vst [vmem:[%s3890_s28 + $0xd0] sm:$0xff] %v2103_v52  ;;  %2232 = vst [vmem:[%s3890_s28 + $0xd8] sm:$0xff] %v2104_v43 }
 0x407   : > { %2237 = vst [vmem:[%s3890_s28 + $0x100] sm:$0xff] %v2109_v6  ;;  %2238 = vst [vmem:[%s3890_s28 + $0x108] sm:$0xff] %v2110_v5  ;;  %v1866_v45 = vpop.permute.xlu1 %1865  ;;  %v1881_v21 = vpop.permute.xlu0 %1880 }
 0x408   : > { %v2107_v63 = vmul.f32 %v2511_v30, %v1866_v45  ;;  %v2108_v10 = vmul.f32 %v2512_v53, %v1866_v45  ;;  %v2113_v4 = vmul.f32 %v2513_v49, %v1881_v21  ;;  %v2114_v51 = vmul.f32 %v2514_v12, %v1881_v21  ;;  %v2536_v45 = vld [vmem:[%s2661_s24 + $0x1b8] sm:$0xff]  ;;  %v2537_v30 = vld [vmem:[%s2661_s24 + $0x1e0] sm:$0xff]  ;;  %v2538_v53 = vld [vmem:[%s2661_s24 + $0x1e8] sm:$0xff] }
 0x409   : > { %v2539_v12 = vld [vmem:[%s2661_s24 + $0x1d0] sm:$0xff] }
 0x40a   : > { %2235 = vst [vmem:[%s3890_s28 + $0xf0] sm:$0xff] %v2107_v63  ;;  %2236 = vst [vmem:[%s3890_s28 + $0xf8] sm:$0xff] %v2108_v10 }
 0x40b   : > { %2241 = vst [vmem:[%s3890_s28 + $0x120] sm:$0xff] %v2113_v4  ;;  %2242 = vst [vmem:[%s3890_s28 + $0x128] sm:$0xff] %v2114_v51  ;;  %v1877_v32 = vpop.permute.xlu1 %1876  ;;  %v1889_v24 = vpop.permute.xlu0 %1888 }
 0x40c   : > { %v2111_v38 = vmul.f32 %v2515_v57, %v1877_v32  ;;  %v2112_v19 = vmul.f32 %v2516_v46, %v1877_v32  ;;  %v2117_v34 = vmul.f32 %v2517_v8, %v1889_v24  ;;  %v2118_v23 = vmul.f32 %v2518_v60, %v1889_v24  ;;  %v2540_v32 = vld [vmem:[%s2661_s24 + $0x1d8] sm:$0xff]  ;;  %v2541_v57 = vld [vmem:[%s2661_s24 + $0x200] sm:$0xff]  ;;  %v2542_v46 = vld [vmem:[%s2661_s24 + $0x208] sm:$0xff] }
 0x40d   : > { %v2543_v60 = vld [vmem:[%s2661_s24 + $0x1f0] sm:$0xff] }
 0x40e   : > { %2239 = vst [vmem:[%s3890_s28 + $0x110] sm:$0xff] %v2111_v38  ;;  %2240 = vst [vmem:[%s3890_s28 + $0x118] sm:$0xff] %v2112_v19 }
 0x40f   : > { %2245 = vst [vmem:[%s3890_s28 + $0x140] sm:$0xff] %v2117_v34  ;;  %2246 = vst [vmem:[%s3890_s28 + $0x148] sm:$0xff] %v2118_v23  ;;  %v1885_v48 = vpop.permute.xlu1 %1884  ;;  %v1897_v47 = vpop.permute.xlu0 %1896 }
 0x410   : > { %v2115_v27 = vmul.f32 %v2519_v44, %v1885_v48  ;;  %v2116_v29 = vmul.f32 %v2520_v1, %v1885_v48  ;;  %v2121_v9 = vmul.f32 %v2521_v7, %v1897_v47  ;;  %v2122_v16 = vmul.f32 %v2522_v58, %v1897_v47  ;;  %v2544_v48 = vld [vmem:[%s2661_s24 + $0x1f8] sm:$0xff]  ;;  %v2545_v44 = vld [vmem:[%s2661_s24 + $0x220] sm:$0xff]  ;;  %v2546_v1 = vld [vmem:[%s2661_s24 + $0x228] sm:$0xff] }
 0x411   : > { %v2547_v58 = vld [vmem:[%s2661_s24 + $0x210] sm:$0xff] }
 0x412   : > { %2243 = vst [vmem:[%s3890_s28 + $0x130] sm:$0xff] %v2115_v27  ;;  %2244 = vst [vmem:[%s3890_s28 + $0x138] sm:$0xff] %v2116_v29 }
 0x413   : > { %2249 = vst [vmem:[%s3890_s28 + $0x160] sm:$0xff] %v2121_v9  ;;  %2250 = vst [vmem:[%s3890_s28 + $0x168] sm:$0xff] %v2122_v16  ;;  %v1893_v36 = vpop.permute.xlu1 %1892  ;;  %v1908_v13 = vpop.permute.xlu0 %1907 }
 0x414   : > { %v2119_v61 = vmul.f32 %v2523_v3, %v1893_v36  ;;  %v2120_v0 = vmul.f32 %v2524_v37, %v1893_v36  ;;  %v2125_v39 = vmul.f32 %v2525_v55, %v1908_v13  ;;  %v2126_v18 = vmul.f32 %v2526_v54, %v1908_v13  ;;  %v2548_v36 = vld [vmem:[%s2661_s24 + $0x218] sm:$0xff]  ;;  %v2549_v3 = vld [vmem:[%s2661_s24 + $0x240] sm:$0xff]  ;;  %v2550_v37 = vld [vmem:[%s2661_s24 + $0x248] sm:$0xff] }
 0x415   : > { %v2551_v54 = vld [vmem:[%s2661_s24 + $0x230] sm:$0xff] }
 0x416   : > { %2247 = vst [vmem:[%s3890_s28 + $0x150] sm:$0xff] %v2119_v61  ;;  %2248 = vst [vmem:[%s3890_s28 + $0x158] sm:$0xff] %v2120_v0 }
 0x417   : > { %2253 = vst [vmem:[%s3890_s28 + $0x180] sm:$0xff] %v2125_v39  ;;  %2254 = vst [vmem:[%s3890_s28 + $0x188] sm:$0xff] %v2126_v18  ;;  %v1901_v26 = vpop.permute.xlu1 %1900  ;;  %v1916_v11 = vpop.permute.xlu0 %1915 }
 0x418   : > { %v2123_v31 = vmul.f32 %v2527_v14, %v1901_v26  ;;  %v2124_v40 = vmul.f32 %v2528_v59, %v1901_v26  ;;  %v2129_v33 = vmul.f32 %v2529_v35, %v1916_v11  ;;  %v2130_v15 = vmul.f32 %v2530_v17, %v1916_v11  ;;  %v2552_v26 = vld [vmem:[%s2661_s24 + $0x238] sm:$0xff]  ;;  %v2553_v14 = vld [vmem:[%s2661_s24 + $0x260] sm:$0xff]  ;;  %v2554_v59 = vld [vmem:[%s2661_s24 + $0x268] sm:$0xff] }
 0x419   : > { %v2555_v17 = vld [vmem:[%s2661_s24 + $0x250] sm:$0xff] }
 0x41a   : > { %2251 = vst [vmem:[%s3890_s28 + $0x170] sm:$0xff] %v2123_v31  ;;  %2252 = vst [vmem:[%s3890_s28 + $0x178] sm:$0xff] %v2124_v40 }
 0x41b   : > { %2257 = vst [vmem:[%s3890_s28 + $0x1a0] sm:$0xff] %v2129_v33  ;;  %2258 = vst [vmem:[%s3890_s28 + $0x1a8] sm:$0xff] %v2130_v15  ;;  %v1912_v50 = vpop.permute.xlu1 %1911  ;;  %v1924_v20 = vpop.permute.xlu0 %1923 }
 0x41c   : > { %v2127_v62 = vmul.f32 %v2531_v41, %v1912_v50  ;;  %v2128_v56 = vmul.f32 %v2532_v22, %v1912_v50  ;;  %v2133_v52 = vmul.f32 %v2533_v25, %v1924_v20  ;;  %v2134_v43 = vmul.f32 %v2534_v28, %v1924_v20  ;;  %v2556_v50 = vld [vmem:[%s2661_s24 + $0x258] sm:$0xff]  ;;  %v2557_v41 = vld [vmem:[%s2661_s24 + $0x280] sm:$0xff]  ;;  %v2558_v22 = vld [vmem:[%s2661_s24 + $0x288] sm:$0xff] }
 0x41d   : > { %v2559_v28 = vld [vmem:[%s2661_s24 + $0x270] sm:$0xff] }
 0x41e   : > { %2255 = vst [vmem:[%s3890_s28 + $0x190] sm:$0xff] %v2127_v62  ;;  %2256 = vst [vmem:[%s3890_s28 + $0x198] sm:$0xff] %v2128_v56 }
 0x41f   : > { %2261 = vst [vmem:[%s3890_s28 + $0x1c0] sm:$0xff] %v2133_v52  ;;  %2262 = vst [vmem:[%s3890_s28 + $0x1c8] sm:$0xff] %v2134_v43  ;;  %v1920_v42 = vpop.permute.xlu1 %1919  ;;  %v1932_v6 = vpop.permute.xlu0 %1931 }
 0x420   : > { %v2131_v5 = vmul.f32 %v2535_v2, %v1920_v42  ;;  %v2132_v21 = vmul.f32 %v2536_v45, %v1920_v42  ;;  %v2137_v63 = vmul.f32 %v2537_v30, %v1932_v6  ;;  %v2138_v10 = vmul.f32 %v2538_v53, %v1932_v6  ;;  %v2560_v42 = vld [vmem:[%s2661_s24 + $0x278] sm:$0xff]  ;;  %v2561_v2 = vld [vmem:[%s2661_s24 + $0x2a0] sm:$0xff]  ;;  %v2562_v45 = vld [vmem:[%s2661_s24 + $0x2a8] sm:$0xff] }
 0x421   : > { %v2563_v53 = vld [vmem:[%s2661_s24 + $0x290] sm:$0xff] }
 0x422   : > { %2259 = vst [vmem:[%s3890_s28 + $0x1b0] sm:$0xff] %v2131_v5  ;;  %2260 = vst [vmem:[%s3890_s28 + $0x1b8] sm:$0xff] %v2132_v21 }
 0x423   : > { %2265 = vst [vmem:[%s3890_s28 + $0x1e0] sm:$0xff] %v2137_v63  ;;  %2266 = vst [vmem:[%s3890_s28 + $0x1e8] sm:$0xff] %v2138_v10  ;;  %v1928_v49 = vpop.permute.xlu1 %1927  ;;  %v1943_v4 = vpop.permute.xlu0 %1942 }
 0x424   : > { %v2135_v51 = vmul.f32 %v2539_v12, %v1928_v49  ;;  %v2136_v24 = vmul.f32 %v2540_v32, %v1928_v49  ;;  %v2141_v38 = vmul.f32 %v2541_v57, %v1943_v4  ;;  %v2142_v19 = vmul.f32 %v2542_v46, %v1943_v4  ;;  %v2564_v49 = vld [vmem:[%s2661_s24 + $0x298] sm:$0xff]  ;;  %v2565_v12 = vld [vmem:[%s2661_s24 + $0x2c0] sm:$0xff]  ;;  %v2566_v32 = vld [vmem:[%s2661_s24 + $0x2c8] sm:$0xff] }
 0x425   : > { %v2567_v46 = vld [vmem:[%s2661_s24 + $0x2b0] sm:$0xff] }
 0x426   : > { %2263 = vst [vmem:[%s3890_s28 + $0x1d0] sm:$0xff] %v2135_v51  ;;  %2264 = vst [vmem:[%s3890_s28 + $0x1d8] sm:$0xff] %v2136_v24 }
 0x427   : > { %2269 = vst [vmem:[%s3890_s28 + $0x200] sm:$0xff] %v2141_v38  ;;  %2270 = vst [vmem:[%s3890_s28 + $0x208] sm:$0xff] %v2142_v19  ;;  %v1936_v8 = vpop.permute.xlu1 %1935  ;;  %v1951_v34 = vpop.permute.xlu0 %1950 }
 0x428   : > { %v2139_v23 = vmul.f32 %v2543_v60, %v1936_v8  ;;  %v2140_v47 = vmul.f32 %v2544_v48, %v1936_v8  ;;  %v2145_v27 = vmul.f32 %v2545_v44, %v1951_v34  ;;  %v2146_v29 = vmul.f32 %v2546_v1, %v1951_v34  ;;  %v2568_v8 = vld [vmem:[%s2661_s24 + $0x2b8] sm:$0xff]  ;;  %v2569_v60 = vld [vmem:[%s2661_s24 + $0x2e0] sm:$0xff]  ;;  %v2570_v48 = vld [vmem:[%s2661_s24 + $0x2e8] sm:$0xff] }
 0x429   : > { %v2571_v1 = vld [vmem:[%s2661_s24 + $0x2d0] sm:$0xff] }
 0x42a   : > { %2267 = vst [vmem:[%s3890_s28 + $0x1f0] sm:$0xff] %v2139_v23  ;;  %2268 = vst [vmem:[%s3890_s28 + $0x1f8] sm:$0xff] %v2140_v47 }
 0x42b   : > { %2273 = vst [vmem:[%s3890_s28 + $0x220] sm:$0xff] %v2145_v27  ;;  %2274 = vst [vmem:[%s3890_s28 + $0x228] sm:$0xff] %v2146_v29  ;;  %v1947_v7 = vpop.permute.xlu1 %1946  ;;  %v1959_v9 = vpop.permute.xlu0 %1958 }
 0x42c   : > { %v2143_v16 = vmul.f32 %v2547_v58, %v1947_v7  ;;  %v2144_v13 = vmul.f32 %v2548_v36, %v1947_v7  ;;  %v2149_v61 = vmul.f32 %v2549_v3, %v1959_v9  ;;  %v2150_v0 = vmul.f32 %v2550_v37, %v1959_v9  ;;  %v2572_v7 = vld [vmem:[%s2661_s24 + $0x2d8] sm:$0xff]  ;;  %v2573_v58 = vld [vmem:[%s2661_s24 + $0x300] sm:$0xff]  ;;  %v2574_v36 = vld [vmem:[%s2661_s24 + $0x308] sm:$0xff] }
 0x42d   : > { %v2575_v37 = vld [vmem:[%s2661_s24 + $0x2f0] sm:$0xff] }
 0x42e   : > { %2271 = vst [vmem:[%s3890_s28 + $0x210] sm:$0xff] %v2143_v16  ;;  %2272 = vst [vmem:[%s3890_s28 + $0x218] sm:$0xff] %v2144_v13 }
 0x42f   : > { %2277 = vst [vmem:[%s3890_s28 + $0x240] sm:$0xff] %v2149_v61  ;;  %2278 = vst [vmem:[%s3890_s28 + $0x248] sm:$0xff] %v2150_v0  ;;  %v1955_v55 = vpop.permute.xlu1 %1954  ;;  %v1967_v39 = vpop.permute.xlu0 %1966 }
 0x430   : > { %v2147_v18 = vmul.f32 %v2551_v54, %v1955_v55  ;;  %v2148_v11 = vmul.f32 %v2552_v26, %v1955_v55  ;;  %v2153_v31 = vmul.f32 %v2553_v14, %v1967_v39  ;;  %v2154_v40 = vmul.f32 %v2554_v59, %v1967_v39  ;;  %v2576_v55 = vld [vmem:[%s2661_s24 + $0x2f8] sm:$0xff]  ;;  %v2577_v54 = vld [vmem:[%s2661_s24 + $0x320] sm:$0xff]  ;;  %v2578_v26 = vld [vmem:[%s2661_s24 + $0x328] sm:$0xff] }
 0x431   : > { %v2579_v59 = vld [vmem:[%s2661_s24 + $0x310] sm:$0xff] }
 0x432   : > { %2275 = vst [vmem:[%s3890_s28 + $0x230] sm:$0xff] %v2147_v18  ;;  %2276 = vst [vmem:[%s3890_s28 + $0x238] sm:$0xff] %v2148_v11 }
 0x433   : > { %2281 = vst [vmem:[%s3890_s28 + $0x260] sm:$0xff] %v2153_v31  ;;  %2282 = vst [vmem:[%s3890_s28 + $0x268] sm:$0xff] %v2154_v40  ;;  %v1963_v35 = vpop.permute.xlu1 %1962  ;;  %v1978_v33 = vpop.permute.xlu0 %1977 }
 0x434   : > { %v2151_v15 = vmul.f32 %v2555_v17, %v1963_v35  ;;  %v2152_v20 = vmul.f32 %v2556_v50, %v1963_v35  ;;  %v2157_v62 = vmul.f32 %v2557_v41, %v1978_v33  ;;  %v2158_v56 = vmul.f32 %v2558_v22, %v1978_v33  ;;  %v2580_v35 = vld [vmem:[%s2661_s24 + $0x318] sm:$0xff]  ;;  %v2581_v17 = vld [vmem:[%s2661_s24 + $0x340] sm:$0xff]  ;;  %v2582_v50 = vld [vmem:[%s2661_s24 + $0x348] sm:$0xff] }
 0x435   : > { %v2583_v22 = vld [vmem:[%s2661_s24 + $0x330] sm:$0xff] }
 0x436   : > { %2279 = vst [vmem:[%s3890_s28 + $0x250] sm:$0xff] %v2151_v15  ;;  %2280 = vst [vmem:[%s3890_s28 + $0x258] sm:$0xff] %v2152_v20 }
 0x437   : > { %2285 = vst [vmem:[%s3890_s28 + $0x280] sm:$0xff] %v2157_v62  ;;  %2286 = vst [vmem:[%s3890_s28 + $0x288] sm:$0xff] %v2158_v56  ;;  %v1971_v25 = vpop.permute.xlu1 %1970  ;;  %v1986_v52 = vpop.permute.xlu0 %1985 }
 0x438   : > { %v2155_v43 = vmul.f32 %v2559_v28, %v1971_v25  ;;  %v2156_v6 = vmul.f32 %v2560_v42, %v1971_v25  ;;  %v2161_v5 = vmul.f32 %v2561_v2, %v1986_v52  ;;  %v2162_v21 = vmul.f32 %v2562_v45, %v1986_v52  ;;  %v2584_v25 = vld [vmem:[%s2661_s24 + $0x338] sm:$0xff]  ;;  %v2585_v28 = vld [vmem:[%s2661_s24 + $0x360] sm:$0xff]  ;;  %v2586_v42 = vld [vmem:[%s2661_s24 + $0x368] sm:$0xff] }
 0x439   : > { %v2587_v45 = vld [vmem:[%s2661_s24 + $0x350] sm:$0xff] }
 0x43a   : > { %2283 = vst [vmem:[%s3890_s28 + $0x270] sm:$0xff] %v2155_v43  ;;  %2284 = vst [vmem:[%s3890_s28 + $0x278] sm:$0xff] %v2156_v6 }
 0x43b   : > { %2289 = vst [vmem:[%s3890_s28 + $0x2a0] sm:$0xff] %v2161_v5  ;;  %2290 = vst [vmem:[%s3890_s28 + $0x2a8] sm:$0xff] %v2162_v21  ;;  %v1982_v30 = vpop.permute.xlu1 %1981  ;;  %v1994_v63 = vpop.permute.xlu0 %1993 }
 0x43c   : > { %v2159_v10 = vmul.f32 %v2563_v53, %v1982_v30  ;;  %v2160_v4 = vmul.f32 %v2564_v49, %v1982_v30  ;;  %v2165_v51 = vmul.f32 %v2565_v12, %v1994_v63  ;;  %v2166_v24 = vmul.f32 %v2566_v32, %v1994_v63  ;;  %v2588_v30 = vld [vmem:[%s2661_s24 + $0x358] sm:$0xff]  ;;  %v2589_v53 = vld [vmem:[%s2661_s24 + $0x380] sm:$0xff]  ;;  %v2590_v49 = vld [vmem:[%s2661_s24 + $0x388] sm:$0xff] }
 0x43d   : > { %v2591_v32 = vld [vmem:[%s2661_s24 + $0x370] sm:$0xff] }
 0x43e   : > { %2287 = vst [vmem:[%s3890_s28 + $0x290] sm:$0xff] %v2159_v10  ;;  %2288 = vst [vmem:[%s3890_s28 + $0x298] sm:$0xff] %v2160_v4 }
 0x43f   : > { %2293 = vst [vmem:[%s3890_s28 + $0x2c0] sm:$0xff] %v2165_v51  ;;  %2294 = vst [vmem:[%s3890_s28 + $0x2c8] sm:$0xff] %v2166_v24  ;;  %v1990_v57 = vpop.permute.xlu1 %1989  ;;  %v2002_v38 = vpop.permute.xlu0 %2001 }
 0x440   : > { %v2163_v19 = vmul.f32 %v2567_v46, %v1990_v57  ;;  %v2164_v34 = vmul.f32 %v2568_v8, %v1990_v57  ;;  %v2169_v23 = vmul.f32 %v2569_v60, %v2002_v38  ;;  %v2170_v47 = vmul.f32 %v2570_v48, %v2002_v38  ;;  %v2592_v57 = vld [vmem:[%s2661_s24 + $0x378] sm:$0xff]  ;;  %v2593_v46 = vld [vmem:[%s2661_s24 + $0x3a0] sm:$0xff]  ;;  %v2594_v8 = vld [vmem:[%s2661_s24 + $0x3a8] sm:$0xff] }
 0x441   : > { %v2595_v48 = vld [vmem:[%s2661_s24 + $0x390] sm:$0xff] }
 0x442   : > { %2291 = vst [vmem:[%s3890_s28 + $0x2b0] sm:$0xff] %v2163_v19  ;;  %2292 = vst [vmem:[%s3890_s28 + $0x2b8] sm:$0xff] %v2164_v34 }
 0x443   : > { %2297 = vst [vmem:[%s3890_s28 + $0x2e0] sm:$0xff] %v2169_v23  ;;  %2298 = vst [vmem:[%s3890_s28 + $0x2e8] sm:$0xff] %v2170_v47  ;;  %v1998_v44 = vpop.permute.xlu1 %1997  ;;  %v2013_v27 = vpop.permute.xlu0 %2012 }
 0x444   : > { %v2167_v29 = vmul.f32 %v2571_v1, %v1998_v44  ;;  %v2168_v9 = vmul.f32 %v2572_v7, %v1998_v44  ;;  %v2173_v16 = vmul.f32 %v2573_v58, %v2013_v27  ;;  %v2174_v13 = vmul.f32 %v2574_v36, %v2013_v27  ;;  %v2596_v44 = vld [vmem:[%s2661_s24 + $0x398] sm:$0xff]  ;;  %v2597_v1 = vld [vmem:[%s2661_s24 + $0x3c0] sm:$0xff]  ;;  %v2598_v7 = vld [vmem:[%s2661_s24 + $0x3c8] sm:$0xff] }
 0x445   : > { %v2599_v36 = vld [vmem:[%s2661_s24 + $0x3b0] sm:$0xff] }
 0x446   : > { %2295 = vst [vmem:[%s3890_s28 + $0x2d0] sm:$0xff] %v2167_v29  ;;  %2296 = vst [vmem:[%s3890_s28 + $0x2d8] sm:$0xff] %v2168_v9 }
 0x447   : > { %2301 = vst [vmem:[%s3890_s28 + $0x300] sm:$0xff] %v2173_v16  ;;  %2302 = vst [vmem:[%s3890_s28 + $0x308] sm:$0xff] %v2174_v13  ;;  %v2006_v3 = vpop.permute.xlu1 %2005  ;;  %v2021_v61 = vpop.permute.xlu0 %2020 }
 0x448   : > { %v2171_v0 = vmul.f32 %v2575_v37, %v2006_v3  ;;  %v2172_v39 = vmul.f32 %v2576_v55, %v2006_v3  ;;  %v2177_v18 = vmul.f32 %v2577_v54, %v2021_v61  ;;  %v2178_v11 = vmul.f32 %v2578_v26, %v2021_v61  ;;  %v2600_v3 = vld [vmem:[%s2661_s24 + $0x3b8] sm:$0xff]  ;;  %v2601_v37 = vld [vmem:[%s2661_s24 + $0x3e0] sm:$0xff]  ;;  %v2602_v55 = vld [vmem:[%s2661_s24 + $0x3e8] sm:$0xff] }
 0x44a   : > { %2299 = vst [vmem:[%s3890_s28 + $0x2f0] sm:$0xff] %v2171_v0  ;;  %2300 = vst [vmem:[%s3890_s28 + $0x2f8] sm:$0xff] %v2172_v39 }
 0x44b   : > { %2305 = vst [vmem:[%s3890_s28 + $0x320] sm:$0xff] %v2177_v18  ;;  %2306 = vst [vmem:[%s3890_s28 + $0x328] sm:$0xff] %v2178_v11  ;;  %v2017_v14 = vpop.permute.xlu1 %2016  ;;  %v2029_v31 = vpop.permute.xlu0 %2028  ;;  %v2603_v18 = vld [vmem:[%s2661_s24 + $0x3d0] sm:$0xff]  ;;  %v2604_v11 = vld [vmem:[%s2661_s24 + $0x3d8] sm:$0xff] }
 0x44c   : > { %v2175_v40 = vmul.f32 %v2579_v59, %v2017_v14  ;;  %v2176_v33 = vmul.f32 %v2580_v35, %v2017_v14  ;;  %v2181_v15 = vmul.f32 %v2581_v17, %v2029_v31  ;;  %v2182_v20 = vmul.f32 %v2582_v50, %v2029_v31  ;;  %v2605_v59 = vld [vmem:[%s2661_s24 + $0x3f0] sm:$0xff]  ;;  %v2606_v35 = vld [vmem:[%s2661_s24 + $0x3f8] sm:$0xff] }
 0x44e   : > { %2303 = vst [vmem:[%s3890_s28 + $0x310] sm:$0xff] %v2175_v40  ;;  %2304 = vst [vmem:[%s3890_s28 + $0x318] sm:$0xff] %v2176_v33 }
 0x44f   : > { %2309 = vst [vmem:[%s3890_s28 + $0x340] sm:$0xff] %v2181_v15  ;;  %2310 = vst [vmem:[%s3890_s28 + $0x348] sm:$0xff] %v2182_v20  ;;  %v2025_v41 = vpop.permute.xlu1 %2024  ;;  %v2037_v62 = vpop.permute.xlu0 %2036 }
 0x450   : > { %v2179_v56 = vmul.f32 %v2583_v22, %v2025_v41  ;;  %v2180_v52 = vmul.f32 %v2584_v25, %v2025_v41  ;;  %v2185_v43 = vmul.f32 %v2585_v28, %v2037_v62  ;;  %v2186_v6 = vmul.f32 %v2586_v42, %v2037_v62 }
 0x452   : > { %2307 = vst [vmem:[%s3890_s28 + $0x330] sm:$0xff] %v2179_v56  ;;  %2308 = vst [vmem:[%s3890_s28 + $0x338] sm:$0xff] %v2180_v52 }
 0x453   : > { %2313 = vst [vmem:[%s3890_s28 + $0x360] sm:$0xff] %v2185_v43  ;;  %2314 = vst [vmem:[%s3890_s28 + $0x368] sm:$0xff] %v2186_v6  ;;  %v2033_v2 = vpop.permute.xlu1 %2032  ;;  %v2048_v5 = vpop.permute.xlu0 %2047 }
 0x454   : > { %v2183_v21 = vmul.f32 %v2587_v45, %v2033_v2  ;;  %v2184_v63 = vmul.f32 %v2588_v30, %v2033_v2  ;;  %v2189_v10 = vmul.f32 %v2589_v53, %v2048_v5  ;;  %v2190_v4 = vmul.f32 %v2590_v49, %v2048_v5 }
 0x456   : > { %2311 = vst [vmem:[%s3890_s28 + $0x350] sm:$0xff] %v2183_v21  ;;  %2312 = vst [vmem:[%s3890_s28 + $0x358] sm:$0xff] %v2184_v63 }
 0x457   : > { %2317 = vst [vmem:[%s3890_s28 + $0x380] sm:$0xff] %v2189_v10  ;;  %2318 = vst [vmem:[%s3890_s28 + $0x388] sm:$0xff] %v2190_v4  ;;  %v2041_v12 = vpop.permute.xlu1 %2040  ;;  %v2056_v51 = vpop.permute.xlu0 %2055 }
 0x458   : > { %v2187_v24 = vmul.f32 %v2591_v32, %v2041_v12  ;;  %v2188_v38 = vmul.f32 %v2592_v57, %v2041_v12  ;;  %v2193_v19 = vmul.f32 %v2593_v46, %v2056_v51  ;;  %v2194_v34 = vmul.f32 %v2594_v8, %v2056_v51 }
 0x45a   : > { %2315 = vst [vmem:[%s3890_s28 + $0x370] sm:$0xff] %v2187_v24  ;;  %2316 = vst [vmem:[%s3890_s28 + $0x378] sm:$0xff] %v2188_v38 }
 0x45b   : > { %2321 = vst [vmem:[%s3890_s28 + $0x3a0] sm:$0xff] %v2193_v19  ;;  %2322 = vst [vmem:[%s3890_s28 + $0x3a8] sm:$0xff] %v2194_v34  ;;  %v2052_v60 = vpop.permute.xlu1 %2051  ;;  %v2064_v23 = vpop.permute.xlu0 %2063 }
 0x45c   : > { %v2191_v47 = vmul.f32 %v2595_v48, %v2052_v60  ;;  %v2192_v27 = vmul.f32 %v2596_v44, %v2052_v60  ;;  %v2197_v29 = vmul.f32 %v2597_v1, %v2064_v23  ;;  %v2198_v9 = vmul.f32 %v2598_v7, %v2064_v23 }
 0x45e   : > { %2319 = vst [vmem:[%s3890_s28 + $0x390] sm:$0xff] %v2191_v47  ;;  %2320 = vst [vmem:[%s3890_s28 + $0x398] sm:$0xff] %v2192_v27 }
 0x45f   : > { %2325 = vst [vmem:[%s3890_s28 + $0x3c0] sm:$0xff] %v2197_v29  ;;  %2326 = vst [vmem:[%s3890_s28 + $0x3c8] sm:$0xff] %v2198_v9  ;;  %v2060_v58 = vpop.permute.xlu1 %2059  ;;  %v2072_v16 = vpop.permute.xlu0 %2071 }
 0x460   : > { %v2195_v13 = vmul.f32 %v2599_v36, %v2060_v58  ;;  %v2196_v61 = vmul.f32 %v2600_v3, %v2060_v58  ;;  %v2201_v0 = vmul.f32 %v2601_v37, %v2072_v16  ;;  %v2202_v39 = vmul.f32 %v2602_v55, %v2072_v16 }
 0x462   : > { %2323 = vst [vmem:[%s3890_s28 + $0x3b0] sm:$0xff] %v2195_v13  ;;  %2324 = vst [vmem:[%s3890_s28 + $0x3b8] sm:$0xff] %v2196_v61 }
 0x463   : > { %2329 = vst [vmem:[%s3890_s28 + $0x3e0] sm:$0xff] %v2201_v0  ;;  %2330 = vst [vmem:[%s3890_s28 + $0x3e8] sm:$0xff] %v2202_v39  ;;  %v2068_v54 = vpop.permute.xlu1 %2067 }
 0x464   : > { %v2199_v26 = vmul.f32 %v2603_v18, %v2068_v54  ;;  %v2200_v14 = vmul.f32 %v2604_v11, %v2068_v54 }
 0x466   : > { %2327 = vst [vmem:[%s3890_s28 + $0x3d0] sm:$0xff] %v2199_v26  ;;  %2328 = vst [vmem:[%s3890_s28 + $0x3d8] sm:$0xff] %v2200_v14 }
 0x467   : > { %v2076_v31 = vpop.permute.xlu1 %2075 }
 0x468   : > { %v2203_v40 = vmul.f32 %v2605_v59, %v2076_v31  ;;  %v2204_v33 = vmul.f32 %v2606_v35, %v2076_v31 }
 0x46a   : > { %2331 = vst [vmem:[%s3890_s28 + $0x3f0] sm:$0xff] %v2203_v40  ;;  %2332 = vst [vmem:[%s3890_s28 + $0x3f8] sm:$0xff] %v2204_v33 }
 0x46b PF: > { %s15_s18 = sadd.s32 1, %s2613_s18  }
 0x46c   : > { %p12_p4 = scmp.ge.s32.totalorder %s15_s18, 4  }
 0x46e   :  { %14 = sbr.rel (!%p12_p4) target bundleno = 1 (0x1), region = 70 }

</bundles_post_ra>
